<compile_context>
chip_gen: v7x
topology: tpu7x:2x2x1
jax: 0.10.0
libtpu: 0.0.40
codegen_flags: <defaults>
</compile_context>

<pallas_src>
import functools

import jax
import jax.numpy as jnp
from jax.experimental import pallas as pl
from jax.experimental.pallas import tpu as pltpu


def _round_up(x, m):
    return (x + m - 1) // m * m


def _ceil_div(a, b):
    return -(-a // b)


# -----------------------------------------------------------------------------
# Kernel: fused 4-layer point-wise MLP for one (batch, point-tile) block.
# Channels-major: points on the lane axis everywhere.
#   x_ref  : (ci, tn)   f32 tile of instance features (cast to bf16 in-kernel)
#   gb_ref : (512, 1)   f32 per-batch column bias (global half of conv1 + bn1)
#   w*_ref : bf16 transposed weights (Cout, Cin) with BN scales folded in
#   t2,t3  : (C, 1)     f32 folded BN shifts;  b4 : (och, 1) conv4 bias
#   o_ref  : (och, tn)  f32 lane-dense logits
# -----------------------------------------------------------------------------
def pointnet_seg2_kernel(x_ref, gb_ref,
                         w1_ref,
                         w2_ref, t2_ref,
                         w3_ref, t3_ref,
                         w4_ref, b4_ref,
                         o_ref):
    x = x_ref[...].astype(jnp.bfloat16)                              # (ci, tn)
    gb = gb_ref[...]                                                 # (512, 1)

    h = jnp.dot(w1_ref[...], x, preferred_element_type=jnp.float32)  # (512, tn)
    h = jnp.maximum(h + gb, 0.0).astype(jnp.bfloat16)                # bn1+relu

    h = jnp.dot(w2_ref[...], h, preferred_element_type=jnp.float32)  # (256, tn)
    h = jnp.maximum(h + t2_ref[...], 0.0).astype(jnp.bfloat16)       # bn2+relu

    h = jnp.dot(w3_ref[...], h, preferred_element_type=jnp.float32)  # (128, tn)
    h = jnp.maximum(h + t3_ref[...], 0.0).astype(jnp.bfloat16)       # bn3+relu

    y = jnp.dot(w4_ref[...], h, preferred_element_type=jnp.float32)  # (och, tn)
    o_ref[...] = (y + b4_ref[...]).astype(o_ref.dtype)               # conv4+bias


@functools.partial(jax.jit, static_argnames=("tn_max",))
def pointnet_seg2_forward(inst_feat, global_feat, kparams, *, tn_max=2048):
    """inst_feat: (B, ci, N), global_feat: (B, cg) -> (B, N, och)."""
    B, ci, N = inst_feat.shape
    cg = global_feat.reshape(B, -1).shape[1]
    c1 = kparams["w1iT"].shape[0]                  # 512
    och = kparams["w4T"].shape[0]

    # Global half of conv1 + bn1 folded into a tiny per-batch column bias; the
    # (B, ci+cg, N) concat tensor is never materialized in HBM.
    gbias = (global_feat.reshape(B, cg).astype(jnp.float32)
             @ kparams["w1g"] + kparams["t1"])[..., None]            # (B, 512, 1)

    # Point-tile size: large tiles to amortize per-grid-step overhead.
    tn = min(tn_max, _round_up(N, 128))
    num_tiles = _ceil_div(N, tn)
    # Keep the number of parallel grid steps even so both v7x TensorCores get
    # work when B is odd / 1.
    if B % 2 == 1 and num_tiles % 2 == 1 and N > 128:
        tn_try = _round_up(_ceil_div(N, num_tiles + 1), 128)
        if _ceil_div(N, tn_try) % 2 == 0:
            tn = tn_try
            num_tiles = _ceil_div(N, tn)
    n_pad = num_tiles * tn

    x = inst_feat
    if n_pad != N:
        # Ragged tail: pad points on the lane axis (only HBM pass, and only
        # when N is not a tile multiple).  Padded columns are sliced off below.
        x = jnp.pad(x, ((0, 0), (0, 0), (0, n_pad - N)))

    # Constant-index operands (weights / shifts): full-array blocks; all tiny.
    full = lambda a: pl.BlockSpec(a.shape, lambda b, i: (0,) * a.ndim)
    weights = (kparams["w1iT"], kparams["w2T"], kparams["t2c"],
               kparams["w3T"], kparams["t3c"], kparams["w4T"], kparams["b4c"])

    out = pl.pallas_call(
        pointnet_seg2_kernel,
        out_shape=jax.ShapeDtypeStruct((B, och, n_pad), jnp.float32),
        grid_spec=pltpu.PrefetchScalarGridSpec(
            num_scalar_prefetch=0,
            grid=(B, n_pad // tn),
            in_specs=[pl.BlockSpec((None, ci, tn), lambda b, i: (b, 0, i)),
                      pl.BlockSpec((None, c1, 1), lambda b, i: (b, 0, 0))]
                     + [full(a) for a in weights],
            out_specs=pl.BlockSpec((None, och, tn), lambda b, i: (b, 0, i)),
        ),
        compiler_params=pltpu.CompilerParams(
            dimension_semantics=("parallel", "parallel"),
            vmem_limit_bytes=48 * 1024 * 1024),       # v7x-safe (<64 MiB/TC)
    )(x, gbias, *weights)

    # (B, och, N) -> (B, N, och) to match the PyTorch module's output layout.
    return jnp.transpose(out[:, :, :N], (0, 2, 1))


# -----------------------------------------------------------------------------
# Parameter construction (mirrors PointNetSeg2.__init__ shapes, eval-mode BN).
# -----------------------------------------------------------------------------
def make_params(ich_inst, ich_global, och, key):
    """Raw f32 parameters (weights stored as (C_in, C_out))."""
    c_in = ich_inst + ich_global
    dims = [(c_in, 512), (512, 256), (256, 128), (128, och)]
    keys = jax.random.split(key, 5)
    eps = 1e-5

    p = {}
    for n, (k, (ci, co)) in enumerate(zip(keys[:4], dims), start=1):
        p[f"w{n}"] = (0.02 * jax.random.normal(k, (ci, co))).astype(jnp.float32)
    for n, (_, co) in enumerate(dims[:3], start=1):
        gamma = jnp.ones((1, co), jnp.float32)
        beta = jnp.zeros((1, co), jnp.float32)
        mean = jnp.zeros((1, co), jnp.float32)
        var = jnp.ones((1, co), jnp.float32)
        p[f"s{n}"] = gamma / jnp.sqrt(var + eps)
        p[f"t{n}"] = beta - mean * p[f"s{n}"]
    p["b4"] = (0.01 * jax.random.normal(keys[4], (1, och))).astype(jnp.float32)
    return p


def prepare_kernel_params(p, ich_inst, och):
    """Fold BN scales, split conv1, transpose to (Cout, Cin), cast to bf16."""
    w1 = p["w1"] * p["s1"]                                   # fold bn1 scale
    w1iT = jnp.transpose(w1[:ich_inst]).astype(jnp.bfloat16)  # (512, ci)
    w1g = w1[ich_inst:].astype(jnp.float32)                   # (cg, 512) wrapper
    w2T = jnp.transpose(p["w2"] * p["s2"]).astype(jnp.bfloat16)  # (256, 512)
    w3T = jnp.transpose(p["w3"] * p["s3"]).astype(jnp.bfloat16)  # (128, 256)
    w4T = jnp.transpose(p["w4"]).astype(jnp.bfloat16)            # (och, 128)
    return {"w1iT": w1iT, "w1g": w1g, "t1": p["t1"],
            "w2T": w2T, "t2c": jnp.transpose(p["t2"]),           # (256, 1)
            "w3T": w3T, "t3c": jnp.transpose(p["t3"]),           # (128, 1)
            "w4T": w4T, "b4c": jnp.transpose(p["b4"])}           # (och, 1)


def reference_forward(inst_feat, global_feat, p):
    """Pure-JAX f32 reference matching the PyTorch module (eval-mode BN)."""
    B, ci, N = inst_feat.shape
    cg = global_feat.reshape(B, -1).shape[1]
    gf = jnp.broadcast_to(global_feat.reshape(B, cg, 1), (B, cg, N))
    x = jnp.concatenate([inst_feat, gf], axis=1)
    x = jnp.transpose(x, (0, 2, 1)).reshape(B * N, ci + cg)
    h = jnp.maximum(x @ p["w1"] * p["s1"] + p["t1"], 0.0)
    h = jnp.maximum(h @ p["w2"] * p["s2"] + p["t2"], 0.0)
    h = jnp.maximum(h @ p["w3"] * p["s3"] + p["t3"], 0.0)
    y = h @ p["w4"] + p["b4"]
    return y.reshape(B, N, -1)


if __name__ == "__main__":
    # Small, grid-friendly sizes: B=2, N=256 points, ich_inst=64, ich_global=64.
    B, N = 2, 256
    ICH_INST, ICH_GLOBAL, OCH = 64, 64, 2

    root = jax.random.PRNGKey(0)
    k_inst, k_glob, k_par = jax.random.split(root, 3)

    inst_feat = jax.random.normal(k_inst, (B, ICH_INST, N), jnp.float32)
    global_feat = jax.random.normal(k_glob, (B, ICH_GLOBAL), jnp.float32)

    raw = make_params(ICH_INST, ICH_GLOBAL, OCH, k_par)
    kparams = prepare_kernel_params(raw, ICH_INST, OCH)

    out = pointnet_seg2_forward(inst_feat, global_feat, kparams)
    out = jax.block_until_ready(out)

    ref = reference_forward(inst_feat, global_feat, raw)
    assert out.shape == (B, N, OCH), out.shape
    max_err = float(jnp.max(jnp.abs(out - ref)))
    assert jnp.allclose(out, ref, atol=1e-2, rtol=1e-2), f"max |err| = {max_err}"

    print("KERNEL_OK")
</pallas_src>

<mosaic_0001>
module attributes {stable_mosaic.version = 11 : i64} {
  func.func @pointnet_seg2_kernel(%arg0: i32, %arg1: i32, %arg2: memref<1x64x256xf32, #tpu.memory_space<vmem>>, %arg3: memref<1x512x1xf32, #tpu.memory_space<vmem>>, %arg4: memref<512x64xbf16, #tpu.memory_space<vmem>>, %arg5: memref<256x512xbf16, #tpu.memory_space<vmem>>, %arg6: memref<256x1xf32, #tpu.memory_space<vmem>>, %arg7: memref<128x256xbf16, #tpu.memory_space<vmem>>, %arg8: memref<128x1xf32, #tpu.memory_space<vmem>>, %arg9: memref<2x128xbf16, #tpu.memory_space<vmem>>, %arg10: memref<2x1xf32, #tpu.memory_space<vmem>>, %arg11: memref<1x2x256xf32, #tpu.memory_space<vmem>>) attributes {dimension_semantics = [#tpu.dimension_semantics<parallel>, #tpu.dimension_semantics<parallel>], iteration_bounds = array<i64: 2, 1>, scalar_prefetch = 0 : i64, scratch_operands = 0 : i64, tpu.core_type = #tpu.core_type<tc>, window_params = [{transform_indices = @transform_0, window_bounds = array<i64: 1, 64, 256>}, {transform_indices = @transform_1, window_bounds = array<i64: 1, 512, 1>}, {pipeline_mode = #tpu.pipeline_mode<synchronous>, transform_indices = @transform_2, window_bounds = array<i64: 512, 64>}, {pipeline_mode = #tpu.pipeline_mode<synchronous>, transform_indices = @transform_3, window_bounds = array<i64: 256, 512>}, {pipeline_mode = #tpu.pipeline_mode<synchronous>, transform_indices = @transform_4, window_bounds = array<i64: 256, 1>}, {pipeline_mode = #tpu.pipeline_mode<synchronous>, transform_indices = @transform_5, window_bounds = array<i64: 128, 256>}, {pipeline_mode = #tpu.pipeline_mode<synchronous>, transform_indices = @transform_6, window_bounds = array<i64: 128, 1>}, {pipeline_mode = #tpu.pipeline_mode<synchronous>, transform_indices = @transform_7, window_bounds = array<i64: 2, 128>}, {pipeline_mode = #tpu.pipeline_mode<synchronous>, transform_indices = @transform_8, window_bounds = array<i64: 2, 1>}, {transform_indices = @transform_9, window_bounds = array<i64: 1, 2, 256>}]} {
    %c0 = arith.constant 0 : index
    %c0_0 = arith.constant 0 : index
    %c0_1 = arith.constant 0 : index
    %0 = vector.load %arg2[%c0, %c0_0, %c0_1] : memref<1x64x256xf32, #tpu.memory_space<vmem>>, vector<1x64x256xf32>
    %1 = vector.shape_cast %0 : vector<1x64x256xf32> to vector<64x256xf32>
    %2 = arith.truncf %1 : vector<64x256xf32> to vector<64x256xbf16>
    %c0_2 = arith.constant 0 : index
    %c0_3 = arith.constant 0 : index
    %c0_4 = arith.constant 0 : index
    %3 = vector.load %arg3[%c0_2, %c0_3, %c0_4] : memref<1x512x1xf32, #tpu.memory_space<vmem>>, vector<1x512x1xf32>
    %4 = vector.shape_cast %3 : vector<1x512x1xf32> to vector<512x1xf32>
    %c0_5 = arith.constant 0 : index
    %c0_6 = arith.constant 0 : index
    %5 = vector.load %arg4[%c0_5, %c0_6] : memref<512x64xbf16, #tpu.memory_space<vmem>>, vector<512x64xbf16>
    %cst = arith.constant dense<0.000000e+00> : vector<512x256xf32>
    %6 = tpu.matmul %5, %2, %cst {dimension_numbers = #tpu.dot_dimension_numbers<[1], [0], [0], [1], [0, 0, 1, 1], [], []>} : vector<512x64xbf16>, vector<64x256xbf16>, vector<512x256xf32> -> vector<512x256xf32>
    %7 = vector.broadcast %4 : vector<512x1xf32> to vector<512x256xf32>
    %8 = arith.addf %6, %7 : vector<512x256xf32>
    %cst_7 = arith.constant 0.000000e+00 : f32
    %9 = vector.broadcast %cst_7 : f32 to vector<512x256xf32>
    %10 = arith.maximumf %8, %9 : vector<512x256xf32>
    %11 = arith.truncf %10 : vector<512x256xf32> to vector<512x256xbf16>
    %c0_8 = arith.constant 0 : index
    %c0_9 = arith.constant 0 : index
    %12 = vector.load %arg5[%c0_8, %c0_9] : memref<256x512xbf16, #tpu.memory_space<vmem>>, vector<256x512xbf16>
    %cst_10 = arith.constant dense<0.000000e+00> : vector<256x256xf32>
    %13 = tpu.matmul %12, %11, %cst_10 {dimension_numbers = #tpu.dot_dimension_numbers<[1], [0], [0], [1], [0, 0, 1, 1], [], []>} : vector<256x512xbf16>, vector<512x256xbf16>, vector<256x256xf32> -> vector<256x256xf32>
    %c0_11 = arith.constant 0 : index
    %c0_12 = arith.constant 0 : index
    %14 = vector.load %arg6[%c0_11, %c0_12] : memref<256x1xf32, #tpu.memory_space<vmem>>, vector<256x1xf32>
    %15 = vector.broadcast %14 : vector<256x1xf32> to vector<256x256xf32>
    %16 = arith.addf %13, %15 : vector<256x256xf32>
    %cst_13 = arith.constant 0.000000e+00 : f32
    %17 = vector.broadcast %cst_13 : f32 to vector<256x256xf32>
    %18 = arith.maximumf %16, %17 : vector<256x256xf32>
    %19 = arith.truncf %18 : vector<256x256xf32> to vector<256x256xbf16>
    %c0_14 = arith.constant 0 : index
    %c0_15 = arith.constant 0 : index
    %20 = vector.load %arg7[%c0_14, %c0_15] : memref<128x256xbf16, #tpu.memory_space<vmem>>, vector<128x256xbf16>
    %cst_16 = arith.constant dense<0.000000e+00> : vector<128x256xf32>
    %21 = tpu.matmul %20, %19, %cst_16 {dimension_numbers = #tpu.dot_dimension_numbers<[1], [0], [0], [1], [0, 0, 1, 1], [], []>} : vector<128x256xbf16>, vector<256x256xbf16>, vector<128x256xf32> -> vector<128x256xf32>
    %c0_17 = arith.constant 0 : index
    %c0_18 = arith.constant 0 : index
    %22 = vector.load %arg8[%c0_17, %c0_18] : memref<128x1xf32, #tpu.memory_space<vmem>>, vector<128x1xf32>
    %23 = vector.broadcast %22 : vector<128x1xf32> to vector<128x256xf32>
    %24 = arith.addf %21, %23 : vector<128x256xf32>
    %cst_19 = arith.constant 0.000000e+00 : f32
    %25 = vector.broadcast %cst_19 : f32 to vector<128x256xf32>
    %26 = arith.maximumf %24, %25 : vector<128x256xf32>
    %27 = arith.truncf %26 : vector<128x256xf32> to vector<128x256xbf16>
    %c0_20 = arith.constant 0 : index
    %c0_21 = arith.constant 0 : index
    %28 = vector.load %arg9[%c0_20, %c0_21] : memref<2x128xbf16, #tpu.memory_space<vmem>>, vector<2x128xbf16>
    %cst_22 = arith.constant dense<0.000000e+00> : vector<2x256xf32>
    %29 = tpu.matmul %28, %27, %cst_22 {dimension_numbers = #tpu.dot_dimension_numbers<[1], [0], [0], [1], [0, 0, 1, 1], [], []>} : vector<2x128xbf16>, vector<128x256xbf16>, vector<2x256xf32> -> vector<2x256xf32>
    %c0_23 = arith.constant 0 : index
    %c0_24 = arith.constant 0 : index
    %30 = vector.load %arg10[%c0_23, %c0_24] : memref<2x1xf32, #tpu.memory_space<vmem>>, vector<2x1xf32>
    %31 = vector.broadcast %30 : vector<2x1xf32> to vector<2x256xf32>
    %32 = arith.addf %29, %31 : vector<2x256xf32>
    %c0_25 = arith.constant 0 : index
    %c0_26 = arith.constant 0 : index
    %c0_27 = arith.constant 0 : index
    %33 = vector.load %arg11[%c0_25, %c0_26, %c0_27] : memref<1x2x256xf32, #tpu.memory_space<vmem>>, vector<1x2x256xf32>
    %34 = vector.shape_cast %33 : vector<1x2x256xf32> to vector<2x256xf32>
    %35 = vector.shape_cast %32 : vector<2x256xf32> to vector<1x2x256xf32>
    tpu.vector_store %arg11[%c0_25, %c0_26, %c0_27], %35 {strides = array<i32>} : memref<1x2x256xf32, #tpu.memory_space<vmem>>, vector<1x2x256xf32>,
    return
  }
  func.func @transform_0(%arg0: i32, %arg1: i32) -> (i32, i32, i32) {
    %c0_i32 = arith.constant 0 : i32
    %c0_i32_0 = arith.constant 0 : i32
    return %arg0, %c0_i32, %arg1 : i32, i32, i32
  }
  func.func @transform_1(%arg0: i32, %arg1: i32) -> (i32, i32, i32) {
    %c0_i32 = arith.constant 0 : i32
    %c0_i32_0 = arith.constant 0 : i32
    %c0_i32_1 = arith.constant 0 : i32
    return %arg0, %c0_i32, %c0_i32_0 : i32, i32, i32
  }
  func.func @transform_2(%arg0: i32, %arg1: i32) -> (i32, i32) {
    %c0_i32 = arith.constant 0 : i32
    %c0_i32_0 = arith.constant 0 : i32
    %c0_i32_1 = arith.constant 0 : i32
    return %c0_i32, %c0_i32_0 : i32, i32
  }
  func.func @transform_3(%arg0: i32, %arg1: i32) -> (i32, i32) {
    %c0_i32 = arith.constant 0 : i32
    %c0_i32_0 = arith.constant 0 : i32
    %c0_i32_1 = arith.constant 0 : i32
    return %c0_i32, %c0_i32_0 : i32, i32
  }
  func.func @transform_4(%arg0: i32, %arg1: i32) -> (i32, i32) {
    %c0_i32 = arith.constant 0 : i32
    %c0_i32_0 = arith.constant 0 : i32
    %c0_i32_1 = arith.constant 0 : i32
    return %c0_i32, %c0_i32_0 : i32, i32
  }
  func.func @transform_5(%arg0: i32, %arg1: i32) -> (i32, i32) {
    %c0_i32 = arith.constant 0 : i32
    %c0_i32_0 = arith.constant 0 : i32
    %c0_i32_1 = arith.constant 0 : i32
    return %c0_i32, %c0_i32_0 : i32, i32
  }
  func.func @transform_6(%arg0: i32, %arg1: i32) -> (i32, i32) {
    %c0_i32 = arith.constant 0 : i32
    %c0_i32_0 = arith.constant 0 : i32
    %c0_i32_1 = arith.constant 0 : i32
    return %c0_i32, %c0_i32_0 : i32, i32
  }
  func.func @transform_7(%arg0: i32, %arg1: i32) -> (i32, i32) {
    %c0_i32 = arith.constant 0 : i32
    %c0_i32_0 = arith.constant 0 : i32
    %c0_i32_1 = arith.constant 0 : i32
    return %c0_i32, %c0_i32_0 : i32, i32
  }
  func.func @transform_8(%arg0: i32, %arg1: i32) -> (i32, i32) {
    %c0_i32 = arith.constant 0 : i32
    %c0_i32_0 = arith.constant 0 : i32
    %c0_i32_1 = arith.constant 0 : i32
    return %c0_i32, %c0_i32_0 : i32, i32
  }
  func.func @transform_9(%arg0: i32, %arg1: i32) -> (i32, i32, i32) {
    %c0_i32 = arith.constant 0 : i32
    %c0_i32_0 = arith.constant 0 : i32
    return %arg0, %c0_i32, %arg1 : i32, i32, i32
  }
}

</mosaic_0001>

<bundles_post_ra>
// kernel: pointnet_seg2_forward.1
= control target key start
LH: loop header
LB: loop body
LE: loop exit
PB: predicated region body
PF: predicated region fallthrough
CT: control target
= control target key end

     0   :  { %14 = vsyncpa [#allocation3], 0  ;;  %s4678_s0 = inlined_call_operand.vmem [shape: f32[2,64,256], index: 0, kind: input, shape index: {}]   ;;  %s4679_s1 = inlined_call_operand.vmem [shape: f32[2,512,1], index: 1, kind: input, shape index: {}]   ;;  %s4680_s2 = inlined_call_operand.vmem [shape: bf16[512,64], index: 2, kind: input, shape index: {}]   ;;  %s4681_s3 = inlined_call_operand.vmem [shape: bf16[256,512], index: 3, kind: input, shape index: {}]   ;;  %s4682_s4 = inlined_call_operand.vmem [shape: f32[256,1], index: 4, kind: input, shape index: {}]   ;;  %s4683_s5 = inlined_call_operand.vmem [shape: bf16[128,256], index: 5, kind: input, shape index: {}]   ;;  %s4684_s6 = inlined_call_operand.vmem [shape: f32[128,1], index: 6, kind: input, shape index: {}]   ;;  %s4685_s7 = inlined_call_operand.vmem [shape: bf16[2,128], index: 7, kind: input, shape index: {}]   ;;  %s4686_s8 = inlined_call_operand.vmem [shape: f32[2,1], index: 8, kind: input, shape index: {}]   ;;  %s4687_s9 = inlined_call_operand.hbm [shape: f32[2,2,256], index: 9, kind: output, shape index: {}]  }
   0x1   :  { %16 = vsyncpa [#allocation3 + $0x1], 0  ;;  %s3866_s30 = smov 0   ;;  %s3868_s10 = smov 0  }
   0x2   :  { %s3870_s11 = smov 0   ;;  %s3872_s12 = smov 0  }
   0x3   :  { %s3874_s13 = smov 0   ;;  %s3876_s14 = smov 0  }
   0x4 LB: > { %s3233_s15 = sadd.s32 4294967295, %s3812_s14   ;;  %s3234_s16 = sadd.s32 4294967294, %s3812_s14   ;;  %s3812_s14 = sphi %s3876_s14, %s22_s14   ;;  %s3808_s13 = sphi %s3874_s13, %s4694_s13   ;;  %s3804_s12 = sphi %s3872_s12, %s4693_s12   ;;  %s3800_s11 = sphi %s3870_s11, %s4692_s11   ;;  %s3796_s10 = sphi %s3868_s10, %s4691_s10   ;;  %s3792_s30 = sphi %s3866_s30, %s4690_s30  }
   0x5   : > { %s34_s17 = sadd.s32 1, %s3808_s13  ;;  %s244_s18 = sadd.s32 1, %s3800_s11 }
   0x6   : > { %p36_p0 = scmp.ge.s32.totalorder %s34_s17, 2  ;;  %p254_p1 = scmp.ne.s32.totalorder %s3800_s11, %s3796_s10 }
   0x7   : > { %p255_p2 = scmp.eq.s32.totalorder %s3233_s15, 1  ;;  %p260_p3 = scmp.ne.s32.totalorder %s3796_s10, %s3792_s30 }
   0x8   : > { %s4696_s17 = smov (%p36_p0, %s34_s17), 0  ;;  %p261_p5 = scmp.eq.s32.totalorder %s3234_s16, 1 }
   0x9   : > { %p3906_p4 = por %p255_p2, %p254_p1  ;;  %s239_s20 = ssub.s32 %s3808_s13, %s4696_s17 }
   0xa   : > { %p3237_p6 = scmp.ge.s32.totalorder %s3812_s14, 1  ;;  %p242_p7 = scmp.eq.s32.totalorder %s239_s20, 0 }
   0xb   : > { %p3913_p8 = por %p261_p5, %p260_p3  ;;  %p321_p9 = scmp.lt.s32.totalorder %s3812_s14, 3 }
   0xc   : > { %s3919_s22 = scalar_select %p242_p7, %s3800_s11, %s244_s18  }
   0xd   : > { %p322_p10 = pnand %p3237_p6, %p321_p9 }
   0xe   : > { %p367_p11 = scmp.lt.s32.totalorder (!%p322_p10), %s3804_s12, 1  ;;  %v3814_v0 = vmov (!%p322_p10), 0   ;;  %v3582_v35 = vld [vmem:[%s4680_s2] sm:$0xff] (!%p322_p10)   ;;  %vm1015_vm0 = vcmask (!%p322_p10), 523264   ;;  %v3583_v40 = vld [vmem:[%s4680_s2 + $0x8] sm:$0xff] (!%p322_p10)   ;;  %v3584_v45 = vld [vmem:[%s4680_s2 + $0x10] sm:$0xff] (!%p322_p10)  }
   0xf   : > { %325 = sbr.rel (%p322_p10) target bundleno = 1376 (0x560), region = 56  ;;  %3581 = vset.pattern.permute.xlu1 (!%p322_p10), %v3814_v0  ;;  %3580 = vset.pattern.permute.xlu0 (!%p322_p10), %v3814_v0  ;;  %v3585_v50 = vld [vmem:[%s4680_s2 + $0x18] sm:$0xff] (!%p322_p10)   ;;  %v3586_v55 = vld [vmem:[%s4680_s2 + $0x20] sm:$0xff] (!%p322_p10)   ;;  %v3587_v60 = vld [vmem:[%s4680_s2 + $0x28] sm:$0xff] (!%p322_p10)   ;;  %s363_s29 = sand.u32 (!%p322_p10), 1, %s3796_s10  }
  0x10   : > { %1144 = vmatprep.mubr.bf16.mxu0 (!%p322_p10), %v3814_v0  ;;  %s3238_s15 = sshll.u32 (!%p322_p10), %s363_s29, 2 }
  0x11   : > { %s365_s18 = scalar_lea.vmem (!%p322_p10), [#allocation2], %s3238_s15 }
  0x12   : > { %s3145_s20 = sshll.u32 (!%p322_p10), %s365_s18, 4  ;;  %s4633_s20 = int_to_ptr.vmem [resolvable:$true] %s3145_s20 }
  0x13   : > { %s3734_s26 = scalar_lea.vmem (!%p322_p10), %s4633_s20, 64 }
  0x14   : > { %p3735_p12 = scmp.ne.s32.totalorder (!%p322_p10), %s4633_s20, %s3734_s26 }
  0x16   : > { %s368_s23 = scalar_select %p367_p11, %s3804_s12, 1 }
  0x17   : > { %p3736_p13 = pnand %p3735_p12, %p3906_p4 }
  0x18   : > { %s3394_s24 = sshll.u32 %s368_s23, 9  ;;  %s3393_s25 = sshll.u32 %s368_s23, 7 }
  0x19   : > { %s3929_s28 = scalar_lea.vmem %s4679_s1, %s3394_s24  ;;  %s3934_s16 = scalar_lea.vmem %s4678_s0, %s3393_s25 }
  0x1a   : > { %v409_v1 = vld [vmem:[%s3929_s28 + $0x10] sm:$0xff]  ;;  %v407_v2 = vld [vmem:[%s3929_s28] sm:$0xff]  ;;  %v384_v3 = vld [vmem:[%s3934_s16 + $0x8] sm:$0xff]  ;;  %s3129_s25 = scalar_lea.sflag [#allocation3], %s363_s29  ;;  %p3737_p0 = pneg %p3736_p13 }
  0x1b   : > { %547 = vperm.xlu1 %3581, %v409_v1   ;;  %537 = vperm.xlu0 %3580, %v407_v2   ;;  %v386_v4 = vld [vmem:[%s3934_s16 + $0x18] sm:$0xff]  ;;  %v383_v5 = vld [vmem:[%s3934_s16] sm:$0xff]  ;;  %v385_v6 = vld [vmem:[%s3934_s16 + $0x10] sm:$0xff] }
  0x1c   : > { %v400_v7 = vpack.c.bf16 %v386_v4, %v384_v3  ;;  %v399_v8 = vpack.c.bf16 %v385_v6, %v383_v5  ;;  %v410_v9 = vld [vmem:[%s3929_s28 + $0x18] sm:$0xff]  ;;  %v408_v10 = vld [vmem:[%s3929_s28 + $0x8] sm:$0xff]  ;;  %v387_v13 = vld [vmem:[%s3934_s16 + $0x20] sm:$0xff] }
  0x1d   : > { %v388_v11 = vld [vmem:[%s3934_s16 + $0x28] sm:$0xff]  ;;  %v390_v12 = vld [vmem:[%s3934_s16 + $0x38] sm:$0xff]  ;;  %v389_v14 = vld [vmem:[%s3934_s16 + $0x30] sm:$0xff] }
  0x1e   : > { %1112 = vmatprep.subr.bf16.mxu0 %v400_v7  ;;  %v402_v15 = vpack.c.bf16 %v390_v12, %v388_v11  ;;  %v392_v16 = vld [vmem:[%s3934_s16 + $0x48] sm:$0xff]  ;;  %v401_v17 = vpack.c.bf16 %v389_v14, %v387_v13  ;;  %v394_v18 = vld [vmem:[%s3934_s16 + $0x58] sm:$0xff]  ;;  %v391_v21 = vld [vmem:[%s3934_s16 + $0x40] sm:$0xff] }
  0x1f   : > { %1113 = vmatpush1.bf16.msra.mxu0 %v399_v8  ;;  %552 = vperm.xlu1 %3581, %v410_v9   ;;  %v412_v19 = vld [vmem:[%s3929_s28 + $0x28] sm:$0xff]  ;;  %v404_v20 = vpack.c.bf16 %v394_v18, %v392_v16  ;;  %v393_v22 = vld [vmem:[%s3934_s16 + $0x50] sm:$0xff]  ;;  %v411_v23 = vld [vmem:[%s3929_s28 + $0x20] sm:$0xff] }
  0x20   : > { %542 = vperm.xlu0 %3580, %v408_v10   ;;  %1114 = vmatprep.subr.bf16.mxu0 %v402_v15  ;;  %v396_v24 = vld [vmem:[%s3934_s16 + $0x68] sm:$0xff]  ;;  %v398_v25 = vld [vmem:[%s3934_s16 + $0x78] sm:$0xff]  ;;  %v403_v26 = vpack.c.bf16 %v393_v22, %v391_v21  ;;  %v395_v29 = vld [vmem:[%s3934_s16 + $0x60] sm:$0xff] }
  0x21   : > { %v414_v27 = vld [vmem:[%s3929_s28 + $0x38] sm:$0xff]  ;;  %v406_v28 = vpack.c.bf16 %v398_v25, %v396_v24  ;;  %v397_v30 = vld [vmem:[%s3934_s16 + $0x70] sm:$0xff]  ;;  %v416_v33 = vld [vmem:[%s3929_s28 + $0x48] sm:$0xff]  ;;  %s3395_s16 = sshll.u32 %s3804_s12, 6  ;;  %s3815_s12 = smov [#allocation2]  }
  0x22   : > { %v413_v31 = vld [vmem:[%s3929_s28 + $0x30] sm:$0xff]  ;;  %v405_v32 = vpack.c.bf16 %v397_v30, %v395_v29  ;;  %v415_v34 = vld [vmem:[%s3929_s28 + $0x40] sm:$0xff]  ;;  %v418_v36 = vld [vmem:[%s3929_s28 + $0x58] sm:$0xff]  ;;  %s3738_s27 = sshll.u32 %s3815_s12, 4  ;;  %s3739_s27 = int_to_ptr.vmem [resolvable:$false] %s3738_s27 }
  0x23   : > { %1115 = vmatpush1.bf16.msra.mxu0 %v401_v17  ;;  %562 = vperm.xlu1 %3581, %v412_v19   ;;  %v417_v37 = vld [vmem:[%s3929_s28 + $0x50] sm:$0xff]  ;;  %v420_v38 = vld [vmem:[%s3929_s28 + $0x68] sm:$0xff]  ;;  %v419_v39 = vld [vmem:[%s3929_s28 + $0x60] sm:$0xff]  ;;  %s3740_s15 = scalar_lea.vmem %s3739_s27, 128  ;;  %p3741_p1 = scmp.lt.s32.totalorder %s4633_s20, %s3739_s27 }
  0x24   : > { %557 = vperm.xlu0 %3580, %v411_v23   ;;  %1116 = vmatprep.subr.bf16.mxu0 %v404_v20  ;;  %v422_v41 = vld [vmem:[%s3929_s28 + $0x78] sm:$0xff]  ;;  %v421_v42 = vld [vmem:[%s3929_s28 + $0x70] sm:$0xff]  ;;  %v424_v43 = vld [vmem:[%s3929_s28 + $0x88] sm:$0xff]  ;;  %p3742_p2 = scmp.lt.s32.totalorder %s3740_s15, %s3734_s26 }
  0x25   : > { %v423_v44 = vld [vmem:[%s3929_s28 + $0x80] sm:$0xff]  ;;  %v426_v46 = vld [vmem:[%s3929_s28 + $0x98] sm:$0xff]  ;;  %v425_v47 = vld [vmem:[%s3929_s28 + $0x90] sm:$0xff] }
  0x26   : > { %v428_v48 = vld [vmem:[%s3929_s28 + $0xa8] sm:$0xff]  ;;  %v427_v49 = vld [vmem:[%s3929_s28 + $0xa0] sm:$0xff]  ;;  %v430_v51 = vld [vmem:[%s3929_s28 + $0xb8] sm:$0xff]  ;;  %p3743_p3 = por %p3742_p2, %p3741_p1 }
  0x27   : > { %1117 = vmatpush1.bf16.msra.mxu0 %v403_v26  ;;  %572 = vperm.xlu1 %3581, %v414_v27   ;;  %v429_v52 = vld [vmem:[%s3929_s28 + $0xb0] sm:$0xff]  ;;  %v432_v53 = vld [vmem:[%s3929_s28 + $0xc8] sm:$0xff]  ;;  %v431_v54 = vld [vmem:[%s3929_s28 + $0xc0] sm:$0xff] }
  0x28   : > { %567 = vperm.xlu0 %3580, %v413_v31   ;;  %1118 = vmatprep.subr.bf16.mxu0 %v406_v28  ;;  %v434_v56 = vld [vmem:[%s3929_s28 + $0xd8] sm:$0xff]  ;;  %v433_v57 = vld [vmem:[%s3929_s28 + $0xd0] sm:$0xff]  ;;  %v436_v58 = vld [vmem:[%s3929_s28 + $0xe8] sm:$0xff]  ;;  %p3744_p5 = pnand %p3743_p3, %p3737_p0 }
  0x29   : > { %v435_v59 = vld [vmem:[%s3929_s28 + $0xe0] sm:$0xff]  ;;  %v438_v61 = vld [vmem:[%s3929_s28 + $0xf8] sm:$0xff]  ;;  %v437_v62 = vld [vmem:[%s3929_s28 + $0xf0] sm:$0xff] }
  0x2a   : > { %v440_v63 = vld [vmem:[%s3929_s28 + $0x108] sm:$0xff]  ;;  %v439_v1 = vld [vmem:[%s3929_s28 + $0x100] sm:$0xff]  ;;  %v3588_v2 = vld [vmem:[%s4680_s2 + $0x30] sm:$0xff]  }
  0x2b   : > { %1119 = vmatpush1.bf16.msra.mxu0 %v405_v32  ;;  %582 = vperm.xlu1 %3581, %v416_v33   ;;  %v442_v3 = vld [vmem:[%s3929_s28 + $0x118] sm:$0xff]  ;;  %v441_v4 = vld [vmem:[%s3929_s28 + $0x110] sm:$0xff]  ;;  %v444_v5 = vld [vmem:[%s3929_s28 + $0x128] sm:$0xff] }
  0x2c   : > { %577 = vperm.xlu0 %3580, %v415_v34   ;;  %v443_v6 = vld [vmem:[%s3929_s28 + $0x120] sm:$0xff]  ;;  %v3589_v7 = vld [vmem:[%s4680_s2 + $0x38] sm:$0xff]   ;;  %v445_v9 = vld [vmem:[%s3929_s28 + $0x130] sm:$0xff] }
  0x2d   : > { %v446_v8 = vld [vmem:[%s3929_s28 + $0x138] sm:$0xff]  ;;  %v448_v10 = vld [vmem:[%s3929_s28 + $0x148] sm:$0xff]  ;;  %v447_v11 = vld [vmem:[%s3929_s28 + $0x140] sm:$0xff] }
  0x2e   : > { %3275 = vmatmul.mubr.msk.bf16.vlgmr.msra.gmra.mrb[0].mxu0 %vm1015_vm0, %v3582_v35  ;;  %v3590_v12 = vld [vmem:[%s4680_s2 + $0x40] sm:$0xff]   ;;  %v450_v13 = vld [vmem:[%s3929_s28 + $0x158] sm:$0xff]  ;;  %v449_v14 = vld [vmem:[%s3929_s28 + $0x150] sm:$0xff] }
  0x2f   : > { %592 = vperm.xlu1 %3581, %v418_v36   ;;  %1154 = vmatprep.mubr.bf16.mxu0 %v3814_v0  ;;  %v452_v15 = vld [vmem:[%s3929_s28 + $0x168] sm:$0xff]  ;;  %v451_v16 = vld [vmem:[%s3929_s28 + $0x160] sm:$0xff]  ;;  %v454_v18 = vld [vmem:[%s3929_s28 + $0x178] sm:$0xff] }
  0x30   : > { %587 = vperm.xlu0 %3580, %v417_v37   ;;  %v3591_v17 = vld [vmem:[%s4680_s2 + $0x48] sm:$0xff]   ;;  %v453_v19 = vld [vmem:[%s3929_s28 + $0x170] sm:$0xff]  ;;  %v455_v21 = vld [vmem:[%s3929_s28 + $0x180] sm:$0xff] }
  0x31   : > { %v456_v20 = vld [vmem:[%s3929_s28 + $0x188] sm:$0xff]  ;;  %v3592_v22 = vld [vmem:[%s4680_s2 + $0x50] sm:$0xff]   ;;  %v458_v23 = vld [vmem:[%s3929_s28 + $0x198] sm:$0xff] }
  0x32   : > { %v457_v24 = vld [vmem:[%s3929_s28 + $0x190] sm:$0xff]  ;;  %v460_v25 = vld [vmem:[%s3929_s28 + $0x1a8] sm:$0xff]  ;;  %v459_v26 = vld [vmem:[%s3929_s28 + $0x1a0] sm:$0xff] }
  0x33   : > { %602 = vperm.xlu1 %3581, %v420_v38   ;;  %v3593_v27 = vld [vmem:[%s4680_s2 + $0x58] sm:$0xff]   ;;  %v461_v29 = vld [vmem:[%s3929_s28 + $0x1b0] sm:$0xff]  ;;  %v464_v30 = vld [vmem:[%s3929_s28 + $0x1c8] sm:$0xff] }
  0x34   : > { %597 = vperm.xlu0 %3580, %v419_v39   ;;  %v462_v28 = vld [vmem:[%s3929_s28 + $0x1b8] sm:$0xff]  ;;  %v463_v31 = vld [vmem:[%s3929_s28 + $0x1c0] sm:$0xff]  ;;  %v465_v34 = vld [vmem:[%s3929_s28 + $0x1d0] sm:$0xff] }
  0x35   : > { %v3594_v32 = vld [vmem:[%s4680_s2 + $0x60] sm:$0xff]   ;;  %v466_v33 = vld [vmem:[%s3929_s28 + $0x1d8] sm:$0xff]  ;;  %v468_v35 = vld [vmem:[%s3929_s28 + $0x1e8] sm:$0xff] }
  0x36   : > { %3276 = vmatmul.mubr.msk.bf16.gmra.mrb[4].mxu0 %vm1015_vm0, %v3583_v40  ;;  %v467_v36 = vld [vmem:[%s3929_s28 + $0x1e0] sm:$0xff]  ;;  %v3595_v37 = vld [vmem:[%s4680_s2 + $0x68] sm:$0xff]   ;;  %v470_v38 = vld [vmem:[%s3929_s28 + $0x1f8] sm:$0xff] }
  0x37   : > { %612 = vperm.xlu1 %3581, %v422_v41   ;;  %1164 = vmatprep.mubr.bf16.mxu0 %v3814_v0  ;;  %v469_v39 = vld [vmem:[%s3929_s28 + $0x1f0] sm:$0xff]  ;;  %v1722_v40 = vld [vmem:[%s4682_s4 + $0x8] sm:$0xff]  ;;  %v1721_v41 = vld [vmem:[%s4682_s4] sm:$0xff]  ;;  %s4631_s28 = scalar_lea.hbm %s4687_s9, %s3395_s16 }
  0x38   : > { %607 = vperm.xlu0 %3580, %v421_v42   ;;  %v3596_v42 = vld [vmem:[%s4680_s2 + $0x70] sm:$0xff]  }
  0x3b   : > { %622 = vperm.xlu1 %3581, %v424_v43   ;;  %v1724_v43 = vld [vmem:[%s4682_s4 + $0x18] sm:$0xff] }
  0x3c   : > { %617 = vperm.xlu0 %3580, %v423_v44   ;;  %v1723_v44 = vld [vmem:[%s4682_s4 + $0x10] sm:$0xff] }
  0x3e   : > { %3277 = vmatmul.mubr.msk.bf16.gmra.mrb[8].mxu0 %vm1015_vm0, %v3584_v45  ;;  %v1726_v45 = vld [vmem:[%s4682_s4 + $0x28] sm:$0xff] }
  0x3f   : > { %632 = vperm.xlu1 %3581, %v426_v46   ;;  %1174 = vmatprep.mubr.bf16.mxu0 %v3814_v0  ;;  %v1725_v46 = vld [vmem:[%s4682_s4 + $0x20] sm:$0xff] }
  0x40   : > { %627 = vperm.xlu0 %3580, %v425_v47   ;;  %v3597_v47 = vld [vmem:[%s4680_s2 + $0x78] sm:$0xff]  }
  0x43   : > { %642 = vperm.xlu1 %3581, %v428_v48   ;;  %v1728_v48 = vld [vmem:[%s4682_s4 + $0x38] sm:$0xff] }
  0x44   : > { %637 = vperm.xlu0 %3580, %v427_v49   ;;  %v1727_v49 = vld [vmem:[%s4682_s4 + $0x30] sm:$0xff] }
  0x46   : > { %3278 = vmatmul.mubr.msk.bf16.gmra.mrb[12].mxu0 %vm1015_vm0, %v3585_v50  ;;  %v1730_v50 = vld [vmem:[%s4682_s4 + $0x48] sm:$0xff] }
  0x47   : > { %652 = vperm.xlu1 %3581, %v430_v51   ;;  %1184 = vmatprep.mubr.bf16.mxu0 %v3814_v0  ;;  %v1729_v51 = vld [vmem:[%s4682_s4 + $0x40] sm:$0xff] }
  0x48   : > { %647 = vperm.xlu0 %3580, %v429_v52   ;;  %v3598_v52 = vld [vmem:[%s4680_s2 + $0x80] sm:$0xff]  }
  0x4b   : > { %662 = vperm.xlu1 %3581, %v432_v53   ;;  %v1732_v53 = vld [vmem:[%s4682_s4 + $0x58] sm:$0xff] }
  0x4c   : > { %657 = vperm.xlu0 %3580, %v431_v54   ;;  %v1731_v54 = vld [vmem:[%s4682_s4 + $0x50] sm:$0xff] }
  0x4e   : > { %3279 = vmatmul.mubr.msk.bf16.gmra.mrb[16].mxu0 %vm1015_vm0, %v3586_v55  ;;  %v1734_v55 = vld [vmem:[%s4682_s4 + $0x68] sm:$0xff] }
  0x4f   : > { %672 = vperm.xlu1 %3581, %v434_v56   ;;  %1194 = vmatprep.mubr.bf16.mxu0 %v3814_v0  ;;  %v1733_v56 = vld [vmem:[%s4682_s4 + $0x60] sm:$0xff] }
  0x50   : > { %667 = vperm.xlu0 %3580, %v433_v57   ;;  %v3599_v57 = vld [vmem:[%s4680_s2 + $0x88] sm:$0xff]  }
  0x53   : > { %682 = vperm.xlu1 %3581, %v436_v58   ;;  %v1736_v58 = vld [vmem:[%s4682_s4 + $0x78] sm:$0xff] }
  0x54   : > { %677 = vperm.xlu0 %3580, %v435_v59   ;;  %v1735_v59 = vld [vmem:[%s4682_s4 + $0x70] sm:$0xff] }
  0x56   : > { %3280 = vmatmul.mubr.msk.bf16.gmra.mrb[20].mxu0 %vm1015_vm0, %v3587_v60  ;;  %v1738_v60 = vld [vmem:[%s4682_s4 + $0x88] sm:$0xff] }
  0x57   : > { %692 = vperm.xlu1 %3581, %v438_v61   ;;  %1204 = vmatprep.mubr.bf16.mxu0 %v3814_v0  ;;  %v1737_v61 = vld [vmem:[%s4682_s4 + $0x80] sm:$0xff] }
  0x58   : > { %687 = vperm.xlu0 %3580, %v437_v62   ;;  %v3600_v62 = vld [vmem:[%s4680_s2 + $0x90] sm:$0xff]  }
  0x5b   : > { %702 = vperm.xlu1 %3581, %v440_v63   ;;  %v1740_v63 = vld [vmem:[%s4682_s4 + $0x98] sm:$0xff] }
  0x5c   : > { %697 = vperm.xlu0 %3580, %v439_v1   ;;  %v1739_v1 = vld [vmem:[%s4682_s4 + $0x90] sm:$0xff] }
  0x5e   : > { %3281 = vmatmul.mubr.msk.bf16.gmra.mrb[24].mxu0 %vm1015_vm0, %v3588_v2  ;;  %v1742_v2 = vld [vmem:[%s4682_s4 + $0xa8] sm:$0xff] }
  0x5f   : > { %712 = vperm.xlu1 %3581, %v442_v3   ;;  %1214 = vmatprep.mubr.bf16.mxu0 %v3814_v0  ;;  %v1741_v3 = vld [vmem:[%s4682_s4 + $0xa0] sm:$0xff] }
  0x60   : > { %707 = vperm.xlu0 %3580, %v441_v4   ;;  %v3601_v4 = vld [vmem:[%s4680_s2 + $0x98] sm:$0xff]  }
  0x63   : > { %722 = vperm.xlu1 %3581, %v444_v5   ;;  %v1744_v5 = vld [vmem:[%s4682_s4 + $0xb8] sm:$0xff] }
  0x64   : > { %717 = vperm.xlu0 %3580, %v443_v6   ;;  %v1743_v6 = vld [vmem:[%s4682_s4 + $0xb0] sm:$0xff] }
  0x66   : > { %3282 = vmatmul.mubr.msk.bf16.gmra.mrb[28].mxu0 %vm1015_vm0, %v3589_v7  ;;  %v1746_v7 = vld [vmem:[%s4682_s4 + $0xc8] sm:$0xff] }
  0x67   : > { %732 = vperm.xlu1 %3581, %v446_v8   ;;  %1224 = vmatprep.mubr.bf16.mxu0 %v3814_v0  ;;  %v1745_v8 = vld [vmem:[%s4682_s4 + $0xc0] sm:$0xff] }
  0x68   : > { %727 = vperm.xlu0 %3580, %v445_v9   ;;  %v3602_v9 = vld [vmem:[%s4680_s2 + $0xa0] sm:$0xff]  }
  0x6b   : > { %742 = vperm.xlu1 %3581, %v448_v10   ;;  %v1748_v10 = vld [vmem:[%s4682_s4 + $0xd8] sm:$0xff] }
  0x6c   : > { %737 = vperm.xlu0 %3580, %v447_v11   ;;  %v1747_v11 = vld [vmem:[%s4682_s4 + $0xd0] sm:$0xff] }
  0x6e   : > { %3283 = vmatmul.mubr.msk.bf16.gmra.mrb[32].mxu0 %vm1015_vm0, %v3590_v12  ;;  %v1750_v12 = vld [vmem:[%s4682_s4 + $0xe8] sm:$0xff] }
  0x6f   : > { %752 = vperm.xlu1 %3581, %v450_v13   ;;  %1234 = vmatprep.mubr.bf16.mxu0 %v3814_v0  ;;  %v1749_v13 = vld [vmem:[%s4682_s4 + $0xe0] sm:$0xff] }
  0x70   : > { %747 = vperm.xlu0 %3580, %v449_v14  }
  0x73   : > { %762 = vperm.xlu1 %3581, %v452_v15   ;;  %v3603_v15 = vld [vmem:[%s4680_s2 + $0xa8] sm:$0xff]  }
  0x74   : > { %757 = vperm.xlu0 %3580, %v451_v16  }
  0x76   : > { %3284 = vmatmul.mubr.msk.bf16.gmra.mrb[36].mxu0 %vm1015_vm0, %v3591_v17  ;;  %v1752_v17 = vld [vmem:[%s4682_s4 + $0xf8] sm:$0xff] }
  0x77   : > { %772 = vperm.xlu1 %3581, %v454_v18   ;;  %1244 = vmatprep.mubr.bf16.mxu0 %v3814_v0  ;;  %v1751_v18 = vld [vmem:[%s4682_s4 + $0xf0] sm:$0xff] }
  0x78   : > { %767 = vperm.xlu0 %3580, %v453_v19  }
  0x7b   : > { %782 = vperm.xlu1 %3581, %v456_v20   ;;  %v2732_v20 = vld [vmem:[%s4684_s6 + $0x8] sm:$0xff] }
  0x7c   : > { %777 = vperm.xlu0 %3580, %v455_v21  }
  0x7e   : > { %3285 = vmatmul.mubr.msk.bf16.gmra.mrb[40].mxu0 %vm1015_vm0, %v3592_v22  ;;  %v2731_v22 = vld [vmem:[%s4684_s6] sm:$0xff] }
  0x7f   : > { %792 = vperm.xlu1 %3581, %v458_v23   ;;  %1254 = vmatprep.mubr.bf16.mxu0 %v3814_v0  ;;  %v3604_v23 = vld [vmem:[%s4680_s2 + $0xb0] sm:$0xff]  }
  0x80   : > { %787 = vperm.xlu0 %3580, %v457_v24   ;;  %v2734_v24 = vld [vmem:[%s4684_s6 + $0x18] sm:$0xff] }
  0x83   : > { %802 = vperm.xlu1 %3581, %v460_v25   ;;  %v2733_v25 = vld [vmem:[%s4684_s6 + $0x10] sm:$0xff] }
  0x84   : > { %797 = vperm.xlu0 %3580, %v459_v26  }
  0x86   : > { %3286 = vmatmul.mubr.msk.bf16.gmra.mrb[44].mxu0 %vm1015_vm0, %v3593_v27 }
  0x87   : > { %812 = vperm.xlu1 %3581, %v462_v28   ;;  %1264 = vmatprep.mubr.bf16.mxu0 %v3814_v0  ;;  %v2736_v28 = vld [vmem:[%s4684_s6 + $0x28] sm:$0xff] }
  0x88   : > { %807 = vperm.xlu0 %3580, %v461_v29   ;;  %v2735_v29 = vld [vmem:[%s4684_s6 + $0x20] sm:$0xff] }
  0x8b   : > { %822 = vperm.xlu1 %3581, %v464_v30   ;;  %v3605_v30 = vld [vmem:[%s4680_s2 + $0xb8] sm:$0xff]  }
  0x8c   : > { %817 = vperm.xlu0 %3580, %v463_v31  }
  0x8e   : > { %3287 = vmatmul.mubr.msk.bf16.gmra.mrb[48].mxu0 %vm1015_vm0, %v3594_v32  ;;  %v2738_v32 = vld [vmem:[%s4684_s6 + $0x38] sm:$0xff] }
  0x8f   : > { %832 = vperm.xlu1 %3581, %v466_v33   ;;  %1274 = vmatprep.mubr.bf16.mxu0 %v3814_v0 }
  0x90   : > { %827 = vperm.xlu0 %3580, %v465_v34   ;;  %v2737_v34 = vld [vmem:[%s4684_s6 + $0x30] sm:$0xff] }
  0x93   : > { %842 = vperm.xlu1 %3581, %v468_v35   ;;  %v2740_v35 = vld [vmem:[%s4684_s6 + $0x48] sm:$0xff] }
  0x94   : > { %837 = vperm.xlu0 %3580, %v467_v36   ;;  %v2739_v36 = vld [vmem:[%s4684_s6 + $0x40] sm:$0xff] }
  0x96   : > { %3288 = vmatmul.mubr.msk.bf16.gmra.mrb[52].mxu0 %vm1015_vm0, %v3595_v37 }
  0x97   : > { %852 = vperm.xlu1 %3581, %v470_v38   ;;  %1284 = vmatprep.mubr.bf16.mxu0 %v3814_v0  ;;  %v3606_v38 = vld [vmem:[%s4680_s2 + $0xc0] sm:$0xff]  }
  0x98   : > { %847 = vperm.xlu0 %3580, %v469_v39  }
  0x9a   : > { %v4211_v14 = vpop.permute.xlu0 %537  ;;  %v4216_v16 = vpop.permute.xlu1 %547 }
  0x9b   : > { %1760 = vperm.xlu1 %3581, %v1722_v40   ;;  %v2742_v40 = vld [vmem:[%s4684_s6 + $0x58] sm:$0xff] }
  0x9c   : > { %1755 = vperm.xlu0 %3580, %v1721_v41   ;;  %v2741_v41 = vld [vmem:[%s4684_s6 + $0x50] sm:$0xff] }
  0x9e   : > { %3289 = vmatmul.mubr.msk.bf16.gmra.mrb[56].mxu0 %vm1015_vm0, %v3596_v42  ;;  %v4231_v21 = vpop.permute.xlu1 %552 }
  0x9f   : > { %1770 = vperm.xlu1 %3581, %v1724_v43   ;;  %1294 = vmatprep.mubr.bf16.mxu0 %v3814_v0  ;;  %v4226_v19 = vpop.permute.xlu0 %542  ;;  %v2744_v43 = vld [vmem:[%s4684_s6 + $0x68] sm:$0xff] }
  0xa0   : > { %1765 = vperm.xlu0 %3580, %v1723_v44  }
  0xa2   : > { %v4248_v27 = vpop.permute.xlu1 %562 }
  0xa3   : > { %1780 = vperm.xlu1 %3581, %v1726_v45   ;;  %v4245_v26 = vpop.permute.xlu0 %557  ;;  %v2743_v45 = vld [vmem:[%s4684_s6 + $0x60] sm:$0xff] }
  0xa4   : > { %1775 = vperm.xlu0 %3580, %v1725_v46   ;;  %v3607_v46 = vld [vmem:[%s4680_s2 + $0xc8] sm:$0xff]  }
  0xa6   : > { %3290 = vmatmul.mubr.msk.bf16.gmra.mrb[60].mxu0 %vm1015_vm0, %v3597_v47  ;;  %v4265_v33 = vpop.permute.xlu1 %572  ;;  %v2746_v47 = vld [vmem:[%s4684_s6 + $0x78] sm:$0xff] }
  0xa7   : > { %1790 = vperm.xlu1 %3581, %v1728_v48   ;;  %1304 = vmatprep.mubr.bf16.mxu0 %v3814_v0  ;;  %v4260_v31 = vpop.permute.xlu0 %567  ;;  %v2745_v48 = vld [vmem:[%s4684_s6 + $0x70] sm:$0xff] }
  0xa8   : > { %1785 = vperm.xlu0 %3580, %v1727_v49  }
  0xaa   : > { %v4283_v39 = vpop.permute.xlu1 %582 }
  0xab   : > { %1800 = vperm.xlu1 %3581, %v1730_v50   ;;  %v4278_v37 = vpop.permute.xlu0 %577 }
  0xac   : > { %1795 = vperm.xlu0 %3580, %v1729_v51   ;;  %v3069_v51 = vld [vmem:[%s4686_s8] sm:$0x3] }
  0xae   : > { %3291 = vmatmul.mubr.msk.bf16.gmra.mrb[64].mxu0 %vm1015_vm0, %v3598_v52  ;;  %v4298_v44 = vpop.permute.xlu1 %592  ;;  %v3608_v52 = vld [vmem:[%s4680_s2 + $0xd0] sm:$0xff]  }
  0xaf   : > { %1810 = vperm.xlu1 %3581, %v1732_v53   ;;  %1314 = vmatprep.mubr.bf16.mxu0 %v3814_v0  ;;  %v4293_v42 = vpop.permute.xlu0 %587 }
  0xb0   : > { %1805 = vperm.xlu0 %3580, %v1731_v54  }
  0xb2   : > { %v4315_v50 = vpop.permute.xlu1 %602 }
  0xb3   : > { %1820 = vperm.xlu1 %3581, %v1734_v55   ;;  %v4312_v49 = vpop.permute.xlu0 %597 }
  0xb4   : > { %1815 = vperm.xlu0 %3580, %v1733_v56  }
  0xb6   : > { %3292 = vmatmul.mubr.msk.bf16.gmra.mrb[68].mxu0 %vm1015_vm0, %v3599_v57  ;;  %v3609_v57 = vld [vmem:[%s4680_s2 + $0xd8] sm:$0xff]  }
  0xb7   : > { %1830 = vperm.xlu1 %3581, %v1736_v58   ;;  %1324 = vmatprep.mubr.bf16.mxu0 %v3814_v0  ;;  %v4324_v53 = vpop.permute.xlu0 %607 }
  0xb8   : > { %1825 = vperm.xlu0 %3580, %v1735_v59  }
  0xbb   : > { %1840 = vperm.xlu1 %3581, %v1738_v60  }
  0xbc   : > { %1835 = vperm.xlu0 %3580, %v1737_v61  }
  0xbe   : > { %3293 = vmatmul.mubr.msk.bf16.gmra.mrb[72].mxu0 %vm1015_vm0, %v3600_v62  ;;  %v3616_v62 = vld [vmem:[%s4681_s3 + $0x4] ss:$16 sps:$4 sm:$0xff]  }
  0xbf   : > { %1850 = vperm.xlu1 %3581, %v1740_v63   ;;  %1334 = vmatprep.mubr.bf16.mxu0 %v3814_v0 }
  0xc0   : > { %1845 = vperm.xlu0 %3580, %v1739_v1   ;;  %2265 = vmatprep.mubr.bf16.mxu1 %v3616_v62 }
  0xc3   : > { %1860 = vperm.xlu1 %3581, %v1742_v2  }
  0xc4   : > { %1855 = vperm.xlu0 %3580, %v1741_v3  }
  0xc6   : > { %3294 = vmatmul.mubr.msk.bf16.gmra.mrb[76].mxu0 %vm1015_vm0, %v3601_v4 }
  0xc7   : > { %1870 = vperm.xlu1 %3581, %v1744_v5   ;;  %1344 = vmatprep.mubr.bf16.mxu0 %v3814_v0 }
  0xc8   : > { %1865 = vperm.xlu0 %3580, %v1743_v6  }
  0xcb   : > { %1880 = vperm.xlu1 %3581, %v1746_v7  }
  0xcc   : > { %1875 = vperm.xlu0 %3580, %v1745_v8  }
  0xce   : > { %3295 = vmatmul.mubr.msk.bf16.gmra.mrb[80].mxu0 %vm1015_vm0, %v3602_v9 }
  0xcf   : > { %1890 = vperm.xlu1 %3581, %v1748_v10   ;;  %1354 = vmatprep.mubr.bf16.mxu0 %v3814_v0  ;;  %v3610_v10 = vld [vmem:[%s4680_s2 + $0xe0] sm:$0xff]  }
  0xd0   : > { %1885 = vperm.xlu0 %3580, %v1747_v11  }
  0xd3   : > { %1900 = vperm.xlu1 %3581, %v1750_v12  }
  0xd4   : > { %1895 = vperm.xlu0 %3580, %v1749_v13  }
  0xd6   : > { %3296 = vmatmul.mubr.msk.bf16.gmra.mrb[84].mxu0 %vm1015_vm0, %v3603_v15 }
  0xd7   : > { %1910 = vperm.xlu1 %3581, %v1752_v17   ;;  %1364 = vmatprep.mubr.bf16.mxu0 %v3814_v0 }
  0xd8   : > { %1905 = vperm.xlu0 %3580, %v1751_v18  }
  0xdb   : > { %2754 = vperm.xlu1 %3581, %v2732_v20  }
  0xdc   : > { %2749 = vperm.xlu0 %3580, %v2731_v22  }
  0xde   : > { %3297 = vmatmul.mubr.msk.bf16.gmra.mrb[88].mxu0 %vm1015_vm0, %v3604_v23 }
  0xdf   : > { %2764 = vperm.xlu1 %3581, %v2734_v24   ;;  %1374 = vmatprep.mubr.bf16.mxu0 %v3814_v0 }
  0xe0   : > { %2759 = vperm.xlu0 %3580, %v2733_v25  }
  0xe3   : > { %2774 = vperm.xlu1 %3581, %v2736_v28   ;;  %v3611_v28 = vld [vmem:[%s4680_s2 + $0xe8] sm:$0xff]  }
  0xe4   : > { %2769 = vperm.xlu0 %3580, %v2735_v29  }
  0xe6   : > { %3298 = vmatmul.mubr.msk.bf16.gmra.mrb[92].mxu0 %vm1015_vm0, %v3605_v30 }
  0xe7   : > { %2784 = vperm.xlu1 %3581, %v2738_v32   ;;  %1384 = vmatprep.mubr.bf16.mxu0 %v3814_v0 }
  0xe8   : > { %2779 = vperm.xlu0 %3580, %v2737_v34  }
  0xeb   : > { %2794 = vperm.xlu1 %3581, %v2740_v35  }
  0xec   : > { %2789 = vperm.xlu0 %3580, %v2739_v36  }
  0xee   : > { %3299 = vmatmul.mubr.msk.bf16.gmra.mrb[96].mxu0 %vm1015_vm0, %v3606_v38 }
  0xef   : > { %2804 = vperm.xlu1 %3581, %v2742_v40   ;;  %1394 = vmatprep.mubr.bf16.mxu0 %v3814_v0 }
  0xf0   : > { %2799 = vperm.xlu0 %3580, %v2741_v41  }
  0xf3   : > { %2814 = vperm.xlu1 %3581, %v2744_v43  }
  0xf4   : > { %2809 = vperm.xlu0 %3580, %v2743_v45  }
  0xf6   : > { %3300 = vmatmul.mubr.msk.bf16.gmra.mrb[100].mxu0 %vm1015_vm0, %v3607_v46 }
  0xf7   : > { %2824 = vperm.xlu1 %3581, %v2746_v47   ;;  %1404 = vmatprep.mubr.bf16.mxu0 %v3814_v0  ;;  %v3612_v47 = vld [vmem:[%s4680_s2 + $0xf0] sm:$0xff]  }
  0xf8   : > { %2819 = vperm.xlu0 %3580, %v2745_v48  }
  0xfc   : > { %3072 = vperm.xlu0 %3580, %v3069_v51  }
  0xfe   : > { %3301 = vmatmul.mubr.msk.bf16.gmra.mrb[104].mxu0 %vm1015_vm0, %v3608_v52 }
  0xff   : > { %1414 = vmatprep.mubr.bf16.mxu0 %v3814_v0 }
 0x101   : > { %v1146_v54 = vpop.f32.mrb[0].mxu0 }
 0x102   : > { %v1147_v55 = vadd.f32 %v1146_v54, %v4211_v14  ;;  %v1148_v56 = vpop.f32.mrb[1].mxu0 }
 0x103   : > { %v1149_v58 = vadd.f32 %v1148_v56, %v4211_v14  ;;  %v1150_v59 = vpop.f32.mrb[2].mxu0 }
 0x104   : > { %v1151_v60 = vadd.f32 %v1150_v59, %v4226_v19  ;;  %v1152_v61 = vpop.f32.mrb[3].mxu0  ;;  %v1465_v1 = vmax.f32 %v1147_v55, 0.0 }
 0x105   : > { %v1153_v63 = vadd.f32 %v1152_v61, %v4226_v19  ;;  %v1466_v3 = vmax.f32 %v1149_v58, 0.0 }
 0x106   : > { %v1467_v2 = vmax.f32 %v1151_v60, 0.0  ;;  %3302 = vmatmul.mubr.msk.bf16.gmra.mrb[108].mxu0 %vm1015_vm0, %v3609_v57 }
 0x107   : > { %v1468_v4 = vmax.f32 %v1153_v63, 0.0  ;;  %1424 = vmatprep.mubr.bf16.mxu0 %v3814_v0  ;;  %v3613_v63 = vld [vmem:[%s4680_s2 + $0xf8] sm:$0xff]  }
 0x108   : > { %v1593_v5 = vpack.c.bf16 %v1467_v2, %v1465_v1 }
 0x109   : > { %v1156_v6 = vpop.f32.mrb[4].mxu0  ;;  %v1594_v7 = vpack.c.bf16 %v1468_v4, %v1466_v3 }
 0x10a   : > { %v1157_v8 = vadd.f32 %v1156_v6, %v4216_v16  ;;  %v1158_v9 = vpop.f32.mrb[5].mxu0 }
 0x10b   : > { %v1159_v11 = vadd.f32 %v1158_v9, %v4216_v16  ;;  %v1160_v12 = vpop.f32.mrb[6].mxu0  ;;  %2233 = vmatprep.subr.bf16.mxu1 %v1594_v7 }
 0x10c   : > { %v1161_v13 = vadd.f32 %v1160_v12, %v4231_v21  ;;  %v1162_v14 = vpop.f32.mrb[7].mxu0  ;;  %2234 = vmatpush1.bf16.msra.mxu1 %v1593_v5  ;;  %v1469_v17 = vmax.f32 %v1157_v8, 0.0 }
 0x10d   : > { %v1163_v15 = vadd.f32 %v1162_v14, %v4231_v21  ;;  %v1470_v19 = vmax.f32 %v1159_v11, 0.0 }
 0x10e   : > { %v1471_v18 = vmax.f32 %v1161_v13, 0.0  ;;  %3303 = vmatmul.mubr.msk.bf16.gmra.mrb[112].mxu0 %vm1015_vm0, %v3610_v10 }
 0x10f   : > { %v1472_v20 = vmax.f32 %v1163_v15, 0.0  ;;  %1434 = vmatprep.mubr.bf16.mxu0 %v3814_v0 }
 0x110   : > { %v1595_v22 = vpack.c.bf16 %v1471_v18, %v1469_v17 }
 0x111   : > { %v1596_v23 = vpack.c.bf16 %v1472_v20, %v1470_v19  ;;  %v1166_v24 = vpop.f32.mrb[8].mxu0 }
 0x112   : > { %v1167_v16 = vadd.f32 %v1166_v24, %v4245_v26  ;;  %v1168_v25 = vpop.f32.mrb[9].mxu0 }
 0x113   : > { %v1169_v21 = vadd.f32 %v1168_v25, %v4245_v26  ;;  %v1170_v29 = vpop.f32.mrb[10].mxu0  ;;  %2235 = vmatprep.subr.bf16.mxu1 %v1596_v23 }
 0x114   : > { %v1171_v30 = vadd.f32 %v1170_v29, %v4248_v27  ;;  %v1172_v32 = vpop.f32.mrb[11].mxu0  ;;  %2236 = vmatpush1.bf16.msra.mxu1 %v1595_v22  ;;  %v1473_v35 = vmax.f32 %v1167_v16, 0.0 }
 0x115   : > { %v1173_v34 = vadd.f32 %v1172_v32, %v4248_v27  ;;  %v1474_v38 = vmax.f32 %v1169_v21, 0.0 }
 0x116   : > { %v1475_v36 = vmax.f32 %v1171_v30, 0.0  ;;  %3304 = vmatmul.mubr.msk.bf16.gmra.mrb[116].mxu0 %vm1015_vm0, %v3611_v28 }
 0x117   : > { %v1476_v40 = vmax.f32 %v1173_v34, 0.0  ;;  %1444 = vmatprep.mubr.bf16.mxu0 %v3814_v0 }
 0x118   : > { %v1597_v41 = vpack.c.bf16 %v1475_v36, %v1473_v35 }
 0x119   : > { %v1598_v43 = vpack.c.bf16 %v1476_v40, %v1474_v38  ;;  %v1176_v45 = vpop.f32.mrb[12].mxu0 }
 0x11a   : > { %v1177_v26 = vadd.f32 %v1176_v45, %v4260_v31  ;;  %v1178_v46 = vpop.f32.mrb[13].mxu0 }
 0x11b   : > { %v1179_v27 = vadd.f32 %v1178_v46, %v4260_v31  ;;  %v1180_v48 = vpop.f32.mrb[14].mxu0  ;;  %2237 = vmatprep.subr.bf16.mxu1 %v1598_v43 }
 0x11c   : > { %v1181_v51 = vadd.f32 %v1180_v48, %v4265_v33  ;;  %v1182_v52 = vpop.f32.mrb[15].mxu0  ;;  %2238 = vmatpush1.bf16.msra.mxu1 %v1597_v41  ;;  %v1477_v55 = vmax.f32 %v1177_v26, 0.0  ;;  %v613_v26 = vpop.permute.xlu1 %612 }
 0x11d   : > { %v1183_v54 = vadd.f32 %v1182_v52, %v4265_v33  ;;  %v1478_v57 = vmax.f32 %v1179_v27, 0.0 }
 0x11e   : > { %v1479_v56 = vmax.f32 %v1181_v51, 0.0  ;;  %3305 = vmatmul.mubr.msk.bf16.gmra.mrb[120].mxu0 %vm1015_vm0, %v3612_v47 }
 0x11f   : > { %v1480_v58 = vmax.f32 %v1183_v54, 0.0  ;;  %1454 = vmatprep.mubr.bf16.mxu0 %v3814_v0 }
 0x120   : > { %v1599_v59 = vpack.c.bf16 %v1479_v56, %v1477_v55  ;;  %v618_v56 = vpop.permute.xlu0 %617 }
 0x121   : > { %v1600_v60 = vpack.c.bf16 %v1480_v58, %v1478_v57  ;;  %v1186_v61 = vpop.f32.mrb[16].mxu0 }
 0x122   : > { %v1187_v31 = vadd.f32 %v1186_v61, %v4278_v37  ;;  %v1188_v62 = vpop.f32.mrb[17].mxu0  ;;  %v623_v61 = vpop.permute.xlu1 %622 }
 0x123   : > { %v1189_v33 = vadd.f32 %v1188_v62, %v4278_v37  ;;  %v1190_v1 = vpop.f32.mrb[18].mxu0  ;;  %2239 = vmatprep.subr.bf16.mxu1 %v1600_v60 }
 0x124   : > { %v1191_v2 = vadd.f32 %v1190_v1, %v4283_v39  ;;  %v1192_v3 = vpop.f32.mrb[19].mxu0  ;;  %2240 = vmatpush1.bf16.msra.mxu1 %v1599_v59  ;;  %v1481_v5 = vmax.f32 %v1187_v31, 0.0 }
 0x125   : > { %v1193_v4 = vadd.f32 %v1192_v3, %v4283_v39  ;;  %v1482_v7 = vmax.f32 %v1189_v33, 0.0 }
 0x126   : > { %v1483_v6 = vmax.f32 %v1191_v2, 0.0  ;;  %3306 = vmatmul.mubr.msk.bf16.gmra.mrb[124].mxu0 %vm1015_vm0, %v3613_v63 }
 0x127   : > { %v1484_v8 = vmax.f32 %v1193_v4, 0.0 }
 0x128   : > { %v1601_v9 = vpack.c.bf16 %v1483_v6, %v1481_v5  ;;  %v628_v6 = vpop.permute.xlu0 %627 }
 0x129   : > { %v1602_v10 = vpack.c.bf16 %v1484_v8, %v1482_v7  ;;  %v1196_v11 = vpop.f32.mrb[20].mxu0 }
 0x12a   : > { %v1197_v12 = vadd.f32 %v1196_v11, %v4293_v42  ;;  %v1198_v37 = vpop.f32.mrb[21].mxu0  ;;  %v633_v11 = vpop.permute.xlu1 %632 }
 0x12b   : > { %v1199_v13 = vadd.f32 %v1198_v37, %v4293_v42  ;;  %v1200_v14 = vpop.f32.mrb[22].mxu0  ;;  %2241 = vmatprep.subr.bf16.mxu1 %v1602_v10 }
 0x12c   : > { %v1201_v15 = vadd.f32 %v1200_v14, %v4298_v44  ;;  %v1202_v17 = vpop.f32.mrb[23].mxu0  ;;  %2242 = vmatpush1.bf16.msra.mxu1 %v1601_v9  ;;  %v1485_v18 = vmax.f32 %v1197_v12, 0.0 }
 0x12d   : > { %v1203_v39 = vadd.f32 %v1202_v17, %v4298_v44  ;;  %v1486_v20 = vmax.f32 %v1199_v13, 0.0 }
 0x12e   : > { %v1487_v19 = vmax.f32 %v1201_v15, 0.0 }
 0x12f   : > { %v1488_v22 = vmax.f32 %v1203_v39, 0.0 }
 0x130   : > { %v1603_v23 = vpack.c.bf16 %v1487_v19, %v1485_v18 }
 0x131   : > { %v1604_v24 = vpack.c.bf16 %v1488_v22, %v1486_v20  ;;  %v1206_v16 = vpop.f32.mrb[24].mxu0  ;;  %v638_v22 = vpop.permute.xlu0 %637 }
 0x132   : > { %v1207_v25 = vadd.f32 %v1206_v16, %v4312_v49  ;;  %v1208_v28 = vpop.f32.mrb[25].mxu0 }
 0x133   : > { %v1209_v42 = vadd.f32 %v1208_v28, %v4312_v49  ;;  %v1210_v21 = vpop.f32.mrb[26].mxu0  ;;  %2243 = vmatprep.subr.bf16.mxu1 %v1604_v24  ;;  %v643_v28 = vpop.permute.xlu1 %642 }
 0x134   : > { %v1211_v29 = vadd.f32 %v1210_v21, %v4315_v50  ;;  %v1212_v30 = vpop.f32.mrb[27].mxu0  ;;  %2244 = vmatpush1.bf16.msra.mxu1 %v1603_v23  ;;  %v1489_v32 = vmax.f32 %v1207_v25, 0.0 }
 0x135   : > { %v1213_v44 = vadd.f32 %v1212_v30, %v4315_v50  ;;  %v1490_v35 = vmax.f32 %v1209_v42, 0.0 }
 0x136   : > { %v1491_v34 = vmax.f32 %v1211_v29, 0.0 }
 0x137   : > { %v1492_v36 = vmax.f32 %v1213_v44, 0.0 }
 0x138   : > { %v1605_v38 = vpack.c.bf16 %v1491_v34, %v1489_v32 }
 0x139   : > { %v1606_v40 = vpack.c.bf16 %v1492_v36, %v1490_v35  ;;  %v1216_v41 = vpop.f32.mrb[28].mxu0 }
 0x13a   : > { %v1217_v43 = vadd.f32 %v1216_v41, %v4324_v53  ;;  %v1218_v45 = vpop.f32.mrb[29].mxu0 }
 0x13b   : > { %v1219_v49 = vadd.f32 %v1218_v45, %v4324_v53  ;;  %v1220_v46 = vpop.f32.mrb[30].mxu0  ;;  %2245 = vmatprep.subr.bf16.mxu1 %v1606_v40  ;;  %v648_v40 = vpop.permute.xlu0 %647 }
 0x13c   : > { %v1221_v47 = vadd.f32 %v1220_v46, %v613_v26  ;;  %v1222_v27 = vpop.f32.mrb[31].mxu0  ;;  %2246 = vmatpush1.bf16.msra.mxu1 %v1605_v38  ;;  %v1493_v50 = vmax.f32 %v1217_v43, 0.0 }
 0x13d   : > { %v1223_v48 = vadd.f32 %v1222_v27, %v613_v26  ;;  %v1494_v52 = vmax.f32 %v1219_v49, 0.0  ;;  %v653_v49 = vpop.permute.xlu1 %652 }
 0x13e   : > { %v1495_v51 = vmax.f32 %v1221_v47, 0.0 }
 0x13f   : > { %v1496_v54 = vmax.f32 %v1223_v48, 0.0 }
 0x140   : > { %v1607_v55 = vpack.c.bf16 %v1495_v51, %v1493_v50 }
 0x141   : > { %v1608_v57 = vpack.c.bf16 %v1496_v54, %v1494_v52  ;;  %v1226_v58 = vpop.f32.mrb[32].mxu0 }
 0x142   : > { %v1227_v59 = vadd.f32 %v1226_v58, %v618_v56  ;;  %v1228_v60 = vpop.f32.mrb[33].mxu0 }
 0x143   : > { %v1229_v31 = vadd.f32 %v1228_v60, %v618_v56  ;;  %v1230_v62 = vpop.f32.mrb[34].mxu0  ;;  %2247 = vmatprep.subr.bf16.mxu1 %v1608_v57  ;;  %v658_v57 = vpop.permute.xlu0 %657 }
 0x144   : > { %v1231_v53 = vadd.f32 %v1230_v62, %v623_v61  ;;  %v1232_v63 = vpop.f32.mrb[35].mxu0  ;;  %2248 = vmatpush1.bf16.msra.mxu1 %v1607_v55  ;;  %v1497_v1 = vmax.f32 %v1227_v59, 0.0 }
 0x145   : > { %v1233_v33 = vadd.f32 %v1232_v63, %v623_v61  ;;  %v1498_v3 = vmax.f32 %v1229_v31, 0.0  ;;  %v663_v31 = vpop.permute.xlu1 %662 }
 0x146   : > { %v1499_v2 = vmax.f32 %v1231_v53, 0.0 }
 0x147   : > { %v1500_v4 = vmax.f32 %v1233_v33, 0.0 }
 0x148   : > { %v1609_v5 = vpack.c.bf16 %v1499_v2, %v1497_v1 }
 0x149   : > { %v1610_v7 = vpack.c.bf16 %v1500_v4, %v1498_v3  ;;  %v1236_v8 = vpop.f32.mrb[36].mxu0 }
 0x14a   : > { %v1237_v9 = vadd.f32 %v1236_v8, %v628_v6  ;;  %v1238_v10 = vpop.f32.mrb[37].mxu0 }
 0x14b   : > { %v1239_v12 = vadd.f32 %v1238_v10, %v628_v6  ;;  %v1240_v37 = vpop.f32.mrb[38].mxu0  ;;  %2249 = vmatprep.subr.bf16.mxu1 %v1610_v7  ;;  %v668_v7 = vpop.permute.xlu0 %667 }
 0x14c   : > { %v1241_v13 = vadd.f32 %v1240_v37, %v633_v11  ;;  %v1242_v14 = vpop.f32.mrb[39].mxu0  ;;  %2250 = vmatpush1.bf16.msra.mxu1 %v1609_v5  ;;  %v1501_v17 = vmax.f32 %v1237_v9, 0.0 }
 0x14d   : > { %v1243_v15 = vadd.f32 %v1242_v14, %v633_v11  ;;  %v1502_v18 = vmax.f32 %v1239_v12, 0.0  ;;  %v673_v12 = vpop.permute.xlu1 %672 }
 0x14e   : > { %v1503_v39 = vmax.f32 %v1241_v13, 0.0 }
 0x14f   : > { %v1504_v19 = vmax.f32 %v1243_v15, 0.0 }
 0x150   : > { %v1611_v20 = vpack.c.bf16 %v1503_v39, %v1501_v17 }
 0x151   : > { %v1612_v23 = vpack.c.bf16 %v1504_v19, %v1502_v18  ;;  %v1246_v24 = vpop.f32.mrb[40].mxu0 }
 0x152   : > { %v1247_v16 = vadd.f32 %v1246_v24, %v638_v22  ;;  %v1248_v25 = vpop.f32.mrb[41].mxu0 }
 0x153   : > { %v1249_v42 = vadd.f32 %v1248_v25, %v638_v22  ;;  %v1250_v21 = vpop.f32.mrb[42].mxu0  ;;  %2251 = vmatprep.subr.bf16.mxu1 %v1612_v23  ;;  %v678_v23 = vpop.permute.xlu0 %677 }
 0x154   : > { %v1251_v29 = vadd.f32 %v1250_v21, %v643_v28  ;;  %v1252_v30 = vpop.f32.mrb[43].mxu0  ;;  %2252 = vmatpush1.bf16.msra.mxu1 %v1611_v20  ;;  %v1505_v32 = vmax.f32 %v1247_v16, 0.0 }
 0x155   : > { %v1253_v44 = vadd.f32 %v1252_v30, %v643_v28  ;;  %v1506_v35 = vmax.f32 %v1249_v42, 0.0  ;;  %v683_v42 = vpop.permute.xlu1 %682 }
 0x156   : > { %v1507_v34 = vmax.f32 %v1251_v29, 0.0 }
 0x157   : > { %v1508_v36 = vmax.f32 %v1253_v44, 0.0 }
 0x158   : > { %v1613_v38 = vpack.c.bf16 %v1507_v34, %v1505_v32 }
 0x159   : > { %v1614_v41 = vpack.c.bf16 %v1508_v36, %v1506_v35  ;;  %v1256_v43 = vpop.f32.mrb[44].mxu0 }
 0x15a   : > { %v1257_v45 = vadd.f32 %v1256_v43, %v648_v40  ;;  %v1258_v26 = vpop.f32.mrb[45].mxu0 }
 0x15b   : > { %v1259_v46 = vadd.f32 %v1258_v26, %v648_v40  ;;  %v1260_v47 = vpop.f32.mrb[46].mxu0  ;;  %2253 = vmatprep.subr.bf16.mxu1 %v1614_v41  ;;  %v688_v41 = vpop.permute.xlu0 %687 }
 0x15c   : > { %v1261_v27 = vadd.f32 %v1260_v47, %v653_v49  ;;  %v1262_v48 = vpop.f32.mrb[47].mxu0  ;;  %2254 = vmatpush1.bf16.msra.mxu1 %v1613_v38  ;;  %v1509_v51 = vmax.f32 %v1257_v45, 0.0 }
 0x15d   : > { %v1263_v50 = vadd.f32 %v1262_v48, %v653_v49  ;;  %v1510_v54 = vmax.f32 %v1259_v46, 0.0  ;;  %v693_v46 = vpop.permute.xlu1 %692 }
 0x15e   : > { %v1511_v52 = vmax.f32 %v1261_v27, 0.0 }
 0x15f   : > { %v1512_v55 = vmax.f32 %v1263_v50, 0.0 }
 0x160   : > { %v1615_v56 = vpack.c.bf16 %v1511_v52, %v1509_v51 }
 0x161   : > { %v1616_v58 = vpack.c.bf16 %v1512_v55, %v1510_v54  ;;  %v1266_v59 = vpop.f32.mrb[48].mxu0 }
 0x162   : > { %v1267_v60 = vadd.f32 %v1266_v59, %v658_v57  ;;  %v1268_v61 = vpop.f32.mrb[49].mxu0 }
 0x163   : > { %v1269_v62 = vadd.f32 %v1268_v61, %v658_v57  ;;  %v1270_v53 = vpop.f32.mrb[50].mxu0  ;;  %2255 = vmatprep.subr.bf16.mxu1 %v1616_v58  ;;  %v698_v58 = vpop.permute.xlu0 %697 }
 0x164   : > { %v1271_v63 = vadd.f32 %v1270_v53, %v663_v31  ;;  %v1272_v33 = vpop.f32.mrb[51].mxu0  ;;  %2256 = vmatpush1.bf16.msra.mxu1 %v1615_v56  ;;  %v1513_v2 = vmax.f32 %v1267_v60, 0.0 }
 0x165   : > { %v1273_v1 = vadd.f32 %v1272_v33, %v663_v31  ;;  %v1514_v4 = vmax.f32 %v1269_v62, 0.0  ;;  %v703_v62 = vpop.permute.xlu1 %702  ;;  %v3614_v33 = vld [vmem:[%s4681_s3] ss:$16 sps:$4 sm:$0xff]  }
 0x166   : > { %v1515_v3 = vmax.f32 %v1271_v63, 0.0 }
 0x167   : > { %v1516_v5 = vmax.f32 %v1273_v1, 0.0 }
 0x168   : > { %v1617_v6 = vpack.c.bf16 %v1515_v3, %v1513_v2  ;;  %v3617_v3 = vld [vmem:[%s4681_s3 + $0x24] ss:$16 sps:$4 sm:$0xff]  }
 0x169   : > { %v1618_v8 = vpack.c.bf16 %v1516_v5, %v1514_v4  ;;  %v1276_v9 = vpop.f32.mrb[52].mxu0 }
 0x16a   : > { %v1277_v10 = vadd.f32 %v1276_v9, %v668_v7  ;;  %v1278_v11 = vpop.f32.mrb[53].mxu0 }
 0x16b   : > { %v1279_v37 = vadd.f32 %v1278_v11, %v668_v7  ;;  %v1280_v13 = vpop.f32.mrb[54].mxu0  ;;  %2257 = vmatprep.subr.bf16.mxu1 %v1618_v8 }
 0x16c   : > { %v1281_v14 = vadd.f32 %v1280_v13, %v673_v12  ;;  %v1282_v15 = vpop.f32.mrb[55].mxu0  ;;  %2258 = vmatpush1.bf16.msra.mxu1 %v1617_v6  ;;  %v1517_v39 = vmax.f32 %v1277_v10, 0.0  ;;  %v708_v10 = vpop.permute.xlu0 %707 }
 0x16d   : > { %v1283_v17 = vadd.f32 %v1282_v15, %v673_v12  ;;  %v1518_v19 = vmax.f32 %v1279_v37, 0.0 }
 0x16e   : > { %v1519_v18 = vmax.f32 %v1281_v14, 0.0  ;;  %v713_v14 = vpop.permute.xlu1 %712 }
 0x16f   : > { %v1520_v20 = vmax.f32 %v1283_v17, 0.0 }
 0x170   : > { %v1619_v22 = vpack.c.bf16 %v1519_v18, %v1517_v39  ;;  %v3619_v39 = vld [vmem:[%s4681_s3 + $0x20] ss:$16 sps:$4 sm:$0xff]  }
 0x171   : > { %v1620_v24 = vpack.c.bf16 %v1520_v20, %v1518_v19  ;;  %v1286_v16 = vpop.f32.mrb[56].mxu0  ;;  %v3620_v20 = vld [vmem:[%s4681_s3 + $0x44] ss:$16 sps:$4 sm:$0xff]  }
 0x172   : > { %v1287_v25 = vadd.f32 %v1286_v16, %v678_v23  ;;  %v1288_v28 = vpop.f32.mrb[57].mxu0 }
 0x173   : > { %v1289_v21 = vadd.f32 %v1288_v28, %v678_v23  ;;  %v1290_v29 = vpop.f32.mrb[58].mxu0  ;;  %2259 = vmatprep.subr.bf16.mxu1 %v1620_v24 }
 0x174   : > { %v1291_v30 = vadd.f32 %v1290_v29, %v683_v42  ;;  %v1292_v44 = vpop.f32.mrb[59].mxu0  ;;  %2260 = vmatpush1.bf16.msra.mxu1 %v1619_v22  ;;  %v1521_v34 = vmax.f32 %v1287_v25, 0.0 }
 0x175   : > { %v1293_v32 = vadd.f32 %v1292_v44, %v683_v42  ;;  %v1522_v36 = vmax.f32 %v1289_v21, 0.0  ;;  %v718_v42 = vpop.permute.xlu0 %717 }
 0x176   : > { %v1523_v35 = vmax.f32 %v1291_v30, 0.0 }
 0x177   : > { %v1524_v38 = vmax.f32 %v1293_v32, 0.0  ;;  %v723_v32 = vpop.permute.xlu1 %722 }
 0x178   : > { %v1621_v40 = vpack.c.bf16 %v1523_v35, %v1521_v34 }
 0x179   : > { %v1622_v43 = vpack.c.bf16 %v1524_v38, %v1522_v36  ;;  %v1296_v45 = vpop.f32.mrb[60].mxu0  ;;  %v3622_v36 = vld [vmem:[%s4681_s3 + $0x40] ss:$16 sps:$4 sm:$0xff]  }
 0x17a   : > { %v1297_v26 = vadd.f32 %v1296_v45, %v688_v41  ;;  %v1298_v49 = vpop.f32.mrb[61].mxu0 }
 0x17b   : > { %v1299_v47 = vadd.f32 %v1298_v49, %v688_v41  ;;  %v1300_v27 = vpop.f32.mrb[62].mxu0  ;;  %2261 = vmatprep.subr.bf16.mxu1 %v1622_v43  ;;  %v3623_v41 = vld [vmem:[%s4681_s3 + $0x64] ss:$16 sps:$4 sm:$0xff]  }
 0x17c   : > { %v1301_v48 = vadd.f32 %v1300_v27, %v693_v46  ;;  %v1302_v50 = vpop.f32.mrb[63].mxu0  ;;  %2262 = vmatpush1.bf16.msra.mxu1 %v1621_v40  ;;  %v1525_v52 = vmax.f32 %v1297_v26, 0.0  ;;  %v728_v27 = vpop.permute.xlu0 %727 }
 0x17d   : > { %v1303_v51 = vadd.f32 %v1302_v50, %v693_v46  ;;  %v1526_v55 = vmax.f32 %v1299_v47, 0.0 }
 0x17e   : > { %v1527_v54 = vmax.f32 %v1301_v48, 0.0 }
 0x17f   : > { %v1528_v56 = vmax.f32 %v1303_v51, 0.0 }
 0x180   : > { %v1623_v57 = vpack.c.bf16 %v1527_v54, %v1525_v52  ;;  %v733_v54 = vpop.permute.xlu1 %732 }
 0x181   : > { %v1624_v59 = vpack.c.bf16 %v1528_v56, %v1526_v55  ;;  %v1306_v60 = vpop.f32.mrb[64].mxu0 }
 0x182   : > { %v1307_v61 = vadd.f32 %v1306_v60, %v698_v58  ;;  %v1308_v31 = vpop.f32.mrb[65].mxu0  ;;  %v3626_v60 = vld [vmem:[%s4681_s3 + $0x84] ss:$16 sps:$4 sm:$0xff]  }
 0x183   : > { %v1309_v53 = vadd.f32 %v1308_v31, %v698_v58  ;;  %v1310_v63 = vpop.f32.mrb[66].mxu0  ;;  %2263 = vmatprep.subr.bf16.mxu1 %v1624_v59 }
 0x184   : > { %v1311_v1 = vadd.f32 %v1310_v63, %v703_v62  ;;  %v1312_v2 = vpop.f32.mrb[67].mxu0  ;;  %2264 = vmatpush1.bf16.msra.mxu1 %v1623_v57  ;;  %v1529_v5 = vmax.f32 %v1307_v61, 0.0  ;;  %v3625_v57 = vld [vmem:[%s4681_s3 + $0x60] ss:$16 sps:$4 sm:$0xff]  }
 0x185   : > { %v1313_v4 = vadd.f32 %v1312_v2, %v703_v62  ;;  %v1530_v7 = vmax.f32 %v1309_v53, 0.0 }
 0x186   : > { %v1531_v6 = vmax.f32 %v1311_v1, 0.0  ;;  %v738_v1 = vpop.permute.xlu0 %737 }
 0x187   : > { %v1532_v8 = vmax.f32 %v1313_v4, 0.0  ;;  %2266 = vmatmul.mubr.bf16.vlgmr.msra.gmra.mrb[0].mxu1 %v3614_v33 }
 0x188   : > { %v1625_v9 = vpack.c.bf16 %v1531_v6, %v1529_v5  ;;  %2275 = vmatprep.mubr.bf16.mxu1 %v3617_v3  ;;  %v743_v6 = vpop.permute.xlu1 %742 }
 0x189   : > { %v1626_v11 = vpack.c.bf16 %v1532_v8, %v1530_v7  ;;  %v1316_v12 = vpop.f32.mrb[68].mxu0 }
 0x18a   : > { %v1317_v37 = vadd.f32 %v1316_v12, %v708_v10  ;;  %v1318_v13 = vpop.f32.mrb[69].mxu0  ;;  %v3629_v12 = vld [vmem:[%s4681_s3 + $0xa4] ss:$16 sps:$4 sm:$0xff]  }
 0x18b   : > { %v1319_v15 = vadd.f32 %v1318_v13, %v708_v10  ;;  %v1320_v17 = vpop.f32.mrb[70].mxu0  ;;  %2426 = vmatprep.subr.bf16.mxu1 %v1626_v11 }
 0x18c   : > { %v1321_v18 = vadd.f32 %v1320_v17, %v713_v14  ;;  %v1322_v19 = vpop.f32.mrb[71].mxu0  ;;  %2427 = vmatpush1.bf16.msra.mxu1 %v1625_v9  ;;  %v1533_v23 = vmax.f32 %v1317_v37, 0.0  ;;  %v3628_v9 = vld [vmem:[%s4681_s3 + $0x80] ss:$16 sps:$4 sm:$0xff]  }
 0x18d   : > { %v1323_v22 = vadd.f32 %v1322_v19, %v713_v14  ;;  %v1534_v16 = vmax.f32 %v1319_v15, 0.0 }
 0x18e   : > { %v1535_v24 = vmax.f32 %v1321_v18, 0.0  ;;  %v748_v18 = vpop.permute.xlu0 %747 }
 0x18f   : > { %v1536_v25 = vmax.f32 %v1323_v22, 0.0  ;;  %2276 = vmatmul.mubr.bf16.gmra.mrb[4].mxu1 %v3619_v39 }
 0x190   : > { %v1627_v28 = vpack.c.bf16 %v1535_v24, %v1533_v23  ;;  %2285 = vmatprep.mubr.bf16.mxu1 %v3620_v20  ;;  %v753_v24 = vpop.permute.xlu1 %752 }
 0x191   : > { %v1628_v21 = vpack.c.bf16 %v1536_v25, %v1534_v16  ;;  %v1326_v29 = vpop.f32.mrb[72].mxu0 }
 0x192   : > { %v1327_v30 = vadd.f32 %v1326_v29, %v718_v42  ;;  %v1328_v44 = vpop.f32.mrb[73].mxu0  ;;  %v3632_v29 = vld [vmem:[%s4681_s3 + $0xc4] ss:$16 sps:$4 sm:$0xff]  }
 0x193   : > { %v1329_v34 = vadd.f32 %v1328_v44, %v718_v42  ;;  %v1330_v35 = vpop.f32.mrb[74].mxu0  ;;  %2428 = vmatprep.subr.bf16.mxu1 %v1628_v21 }
 0x194   : > { %v1331_v38 = vadd.f32 %v1330_v35, %v723_v32  ;;  %v1332_v40 = vpop.f32.mrb[75].mxu0  ;;  %2429 = vmatpush1.bf16.msra.mxu1 %v1627_v28  ;;  %v1537_v45 = vmax.f32 %v1327_v30, 0.0  ;;  %v3631_v28 = vld [vmem:[%s4681_s3 + $0xa0] ss:$16 sps:$4 sm:$0xff]  }
 0x195   : > { %v1333_v43 = vadd.f32 %v1332_v40, %v723_v32  ;;  %v1538_v49 = vmax.f32 %v1329_v34, 0.0 }
 0x196   : > { %v1539_v26 = vmax.f32 %v1331_v38, 0.0  ;;  %v758_v38 = vpop.permute.xlu0 %757 }
 0x197   : > { %v1540_v46 = vmax.f32 %v1333_v43, 0.0  ;;  %2286 = vmatmul.mubr.bf16.gmra.mrb[8].mxu1 %v3622_v36 }
 0x198   : > { %v1629_v47 = vpack.c.bf16 %v1539_v26, %v1537_v45  ;;  %2295 = vmatprep.mubr.bf16.mxu1 %v3623_v41  ;;  %v763_v26 = vpop.permute.xlu1 %762 }
 0x199   : > { %v1630_v48 = vpack.c.bf16 %v1540_v46, %v1538_v49  ;;  %v1336_v50 = vpop.f32.mrb[76].mxu0 }
 0x19a   : > { %v1337_v51 = vadd.f32 %v1336_v50, %v728_v27  ;;  %v1338_v52 = vpop.f32.mrb[77].mxu0  ;;  %v3635_v50 = vld [vmem:[%s4681_s3 + $0xe4] ss:$16 sps:$4 sm:$0xff]  }
 0x19b   : > { %v1339_v55 = vadd.f32 %v1338_v52, %v728_v27  ;;  %v1340_v56 = vpop.f32.mrb[78].mxu0  ;;  %2430 = vmatprep.subr.bf16.mxu1 %v1630_v48 }
 0x19c   : > { %v1341_v58 = vadd.f32 %v1340_v56, %v733_v54  ;;  %v1342_v59 = vpop.f32.mrb[79].mxu0  ;;  %2431 = vmatpush1.bf16.msra.mxu1 %v1629_v47  ;;  %v1541_v31 = vmax.f32 %v1337_v51, 0.0  ;;  %v3634_v47 = vld [vmem:[%s4681_s3 + $0xc0] ss:$16 sps:$4 sm:$0xff]  }
 0x19d   : > { %v1343_v61 = vadd.f32 %v1342_v59, %v733_v54  ;;  %v1542_v53 = vmax.f32 %v1339_v55, 0.0 }
 0x19e   : > { %v1543_v62 = vmax.f32 %v1341_v58, 0.0  ;;  %v768_v58 = vpop.permute.xlu0 %767 }
 0x19f   : > { %v1544_v63 = vmax.f32 %v1343_v61, 0.0  ;;  %2296 = vmatmul.mubr.bf16.gmra.mrb[12].mxu1 %v3625_v57 }
 0x1a0   : > { %v1631_v33 = vpack.c.bf16 %v1543_v62, %v1541_v31  ;;  %2305 = vmatprep.mubr.bf16.mxu1 %v3626_v60  ;;  %v773_v62 = vpop.permute.xlu1 %772 }
 0x1a1   : > { %v1632_v2 = vpack.c.bf16 %v1544_v63, %v1542_v53  ;;  %v1346_v3 = vpop.f32.mrb[80].mxu0 }
 0x1a2   : > { %v1347_v4 = vadd.f32 %v1346_v3, %v738_v1  ;;  %v1348_v5 = vpop.f32.mrb[81].mxu0  ;;  %v3638_v3 = vld [vmem:[%s4681_s3 + $0x104] ss:$16 sps:$4 sm:$0xff]  }
 0x1a3   : > { %v1349_v7 = vadd.f32 %v1348_v5, %v738_v1  ;;  %v1350_v8 = vpop.f32.mrb[82].mxu0  ;;  %2432 = vmatprep.subr.bf16.mxu1 %v1632_v2 }
 0x1a4   : > { %v1351_v10 = vadd.f32 %v1350_v8, %v743_v6  ;;  %v1352_v11 = vpop.f32.mrb[83].mxu0  ;;  %2433 = vmatpush1.bf16.msra.mxu1 %v1631_v33  ;;  %v1545_v13 = vmax.f32 %v1347_v4, 0.0  ;;  %v3637_v33 = vld [vmem:[%s4681_s3 + $0xe0] ss:$16 sps:$4 sm:$0xff]  }
 0x1a5   : > { %v1353_v37 = vadd.f32 %v1352_v11, %v743_v6  ;;  %v1546_v15 = vmax.f32 %v1349_v7, 0.0 }
 0x1a6   : > { %v1547_v14 = vmax.f32 %v1351_v10, 0.0  ;;  %v778_v10 = vpop.permute.xlu0 %777 }
 0x1a7   : > { %v1548_v17 = vmax.f32 %v1353_v37, 0.0  ;;  %2306 = vmatmul.mubr.bf16.gmra.mrb[16].mxu1 %v3628_v9 }
 0x1a8   : > { %v1633_v39 = vpack.c.bf16 %v1547_v14, %v1545_v13  ;;  %2315 = vmatprep.mubr.bf16.mxu1 %v3629_v12  ;;  %v783_v14 = vpop.permute.xlu1 %782 }
 0x1a9   : > { %v1634_v19 = vpack.c.bf16 %v1548_v17, %v1546_v15  ;;  %v1356_v20 = vpop.f32.mrb[84].mxu0 }
 0x1aa   : > { %v1357_v22 = vadd.f32 %v1356_v20, %v748_v18  ;;  %v1358_v23 = vpop.f32.mrb[85].mxu0  ;;  %v3641_v20 = vld [vmem:[%s4681_s3 + $0x124] ss:$16 sps:$4 sm:$0xff]  }
 0x1ab   : > { %v1359_v16 = vadd.f32 %v1358_v23, %v748_v18  ;;  %v1360_v25 = vpop.f32.mrb[86].mxu0  ;;  %2434 = vmatprep.subr.bf16.mxu1 %v1634_v19 }
 0x1ac   : > { %v1361_v42 = vadd.f32 %v1360_v25, %v753_v24  ;;  %v1362_v21 = vpop.f32.mrb[87].mxu0  ;;  %2435 = vmatpush1.bf16.msra.mxu1 %v1633_v39  ;;  %v1549_v44 = vmax.f32 %v1357_v22, 0.0  ;;  %v3640_v39 = vld [vmem:[%s4681_s3 + $0x100] ss:$16 sps:$4 sm:$0xff]  }
 0x1ad   : > { %v1363_v30 = vadd.f32 %v1362_v21, %v753_v24  ;;  %v1550_v34 = vmax.f32 %v1359_v16, 0.0 }
 0x1ae   : > { %v1551_v32 = vmax.f32 %v1361_v42, 0.0  ;;  %v788_v42 = vpop.permute.xlu0 %787 }
 0x1af   : > { %v1552_v35 = vmax.f32 %v1363_v30, 0.0  ;;  %2316 = vmatmul.mubr.bf16.gmra.mrb[20].mxu1 %v3631_v28 }
 0x1b0   : > { %v1635_v36 = vpack.c.bf16 %v1551_v32, %v1549_v44  ;;  %2325 = vmatprep.mubr.bf16.mxu1 %v3632_v29  ;;  %v793_v32 = vpop.permute.xlu1 %792 }
 0x1b1   : > { %v1636_v40 = vpack.c.bf16 %v1552_v35, %v1550_v34  ;;  %v1366_v41 = vpop.f32.mrb[88].mxu0 }
 0x1b2   : > { %v1367_v43 = vadd.f32 %v1366_v41, %v758_v38  ;;  %v1368_v45 = vpop.f32.mrb[89].mxu0  ;;  %v3644_v41 = vld [vmem:[%s4681_s3 + $0x144] ss:$16 sps:$4 sm:$0xff]  }
 0x1b3   : > { %v1369_v49 = vadd.f32 %v1368_v45, %v758_v38  ;;  %v1370_v46 = vpop.f32.mrb[90].mxu0  ;;  %2436 = vmatprep.subr.bf16.mxu1 %v1636_v40 }
 0x1b4   : > { %v1371_v27 = vadd.f32 %v1370_v46, %v763_v26  ;;  %v1372_v48 = vpop.f32.mrb[91].mxu0  ;;  %2437 = vmatpush1.bf16.msra.mxu1 %v1635_v36  ;;  %v1553_v52 = vmax.f32 %v1367_v43, 0.0  ;;  %v3643_v36 = vld [vmem:[%s4681_s3 + $0x120] ss:$16 sps:$4 sm:$0xff]  }
 0x1b5   : > { %v1373_v51 = vadd.f32 %v1372_v48, %v763_v26  ;;  %v1554_v55 = vmax.f32 %v1369_v49, 0.0 }
 0x1b6   : > { %v1555_v54 = vmax.f32 %v1371_v27, 0.0  ;;  %v798_v27 = vpop.permute.xlu0 %797 }
 0x1b7   : > { %v1556_v56 = vmax.f32 %v1373_v51, 0.0  ;;  %2326 = vmatmul.mubr.bf16.gmra.mrb[24].mxu1 %v3634_v47 }
 0x1b8   : > { %v1637_v57 = vpack.c.bf16 %v1555_v54, %v1553_v52  ;;  %2335 = vmatprep.mubr.bf16.mxu1 %v3635_v50  ;;  %v803_v54 = vpop.permute.xlu1 %802 }
 0x1b9   : > { %v1638_v59 = vpack.c.bf16 %v1556_v56, %v1554_v55  ;;  %v1376_v60 = vpop.f32.mrb[92].mxu0 }
 0x1ba   : > { %v1377_v61 = vadd.f32 %v1376_v60, %v768_v58  ;;  %v1378_v31 = vpop.f32.mrb[93].mxu0  ;;  %v3647_v60 = vld [vmem:[%s4681_s3 + $0x164] ss:$16 sps:$4 sm:$0xff]  }
 0x1bb   : > { %v1379_v53 = vadd.f32 %v1378_v31, %v768_v58  ;;  %v1380_v63 = vpop.f32.mrb[94].mxu0  ;;  %2438 = vmatprep.subr.bf16.mxu1 %v1638_v59 }
 0x1bc   : > { %v1381_v1 = vadd.f32 %v1380_v63, %v773_v62  ;;  %v1382_v2 = vpop.f32.mrb[95].mxu0  ;;  %2439 = vmatpush1.bf16.msra.mxu1 %v1637_v57  ;;  %v1557_v5 = vmax.f32 %v1377_v61, 0.0  ;;  %v3646_v57 = vld [vmem:[%s4681_s3 + $0x140] ss:$16 sps:$4 sm:$0xff]  }
 0x1bd   : > { %v1383_v4 = vadd.f32 %v1382_v2, %v773_v62  ;;  %v1558_v7 = vmax.f32 %v1379_v53, 0.0 }
 0x1be   : > { %v1559_v6 = vmax.f32 %v1381_v1, 0.0  ;;  %v808_v1 = vpop.permute.xlu0 %807 }
 0x1bf   : > { %v1560_v8 = vmax.f32 %v1383_v4, 0.0  ;;  %2336 = vmatmul.mubr.bf16.gmra.mrb[28].mxu1 %v3637_v33 }
 0x1c0   : > { %v1639_v9 = vpack.c.bf16 %v1559_v6, %v1557_v5  ;;  %2345 = vmatprep.mubr.bf16.mxu1 %v3638_v3  ;;  %v813_v6 = vpop.permute.xlu1 %812 }
 0x1c1   : > { %v1640_v11 = vpack.c.bf16 %v1560_v8, %v1558_v7  ;;  %v1386_v12 = vpop.f32.mrb[96].mxu0 }
 0x1c2   : > { %v1387_v37 = vadd.f32 %v1386_v12, %v778_v10  ;;  %v1388_v13 = vpop.f32.mrb[97].mxu0  ;;  %v3650_v12 = vld [vmem:[%s4681_s3 + $0x184] ss:$16 sps:$4 sm:$0xff]  }
 0x1c3   : > { %v1389_v15 = vadd.f32 %v1388_v13, %v778_v10  ;;  %v1390_v17 = vpop.f32.mrb[98].mxu0  ;;  %2440 = vmatprep.subr.bf16.mxu1 %v1640_v11 }
 0x1c4   : > { %v1391_v18 = vadd.f32 %v1390_v17, %v783_v14  ;;  %v1392_v19 = vpop.f32.mrb[99].mxu0  ;;  %2441 = vmatpush1.bf16.msra.mxu1 %v1639_v9  ;;  %v1561_v23 = vmax.f32 %v1387_v37, 0.0  ;;  %v3649_v9 = vld [vmem:[%s4681_s3 + $0x160] ss:$16 sps:$4 sm:$0xff]  }
 0x1c5   : > { %v1393_v22 = vadd.f32 %v1392_v19, %v783_v14  ;;  %v1562_v16 = vmax.f32 %v1389_v15, 0.0 }
 0x1c6   : > { %v1563_v24 = vmax.f32 %v1391_v18, 0.0  ;;  %v818_v18 = vpop.permute.xlu0 %817 }
 0x1c7   : > { %v1564_v25 = vmax.f32 %v1393_v22, 0.0  ;;  %2346 = vmatmul.mubr.bf16.gmra.mrb[32].mxu1 %v3640_v39 }
 0x1c8   : > { %v1641_v28 = vpack.c.bf16 %v1563_v24, %v1561_v23  ;;  %2355 = vmatprep.mubr.bf16.mxu1 %v3641_v20  ;;  %v823_v24 = vpop.permute.xlu1 %822 }
 0x1c9   : > { %v1642_v21 = vpack.c.bf16 %v1564_v25, %v1562_v16  ;;  %v1396_v29 = vpop.f32.mrb[100].mxu0 }
 0x1ca   : > { %v1397_v30 = vadd.f32 %v1396_v29, %v788_v42  ;;  %v1398_v44 = vpop.f32.mrb[101].mxu0  ;;  %v3653_v29 = vld [vmem:[%s4681_s3 + $0x1a4] ss:$16 sps:$4 sm:$0xff]  }
 0x1cb   : > { %v1399_v34 = vadd.f32 %v1398_v44, %v788_v42  ;;  %v1400_v35 = vpop.f32.mrb[102].mxu0  ;;  %2442 = vmatprep.subr.bf16.mxu1 %v1642_v21 }
 0x1cc   : > { %v1401_v38 = vadd.f32 %v1400_v35, %v793_v32  ;;  %v1402_v40 = vpop.f32.mrb[103].mxu0  ;;  %2443 = vmatpush1.bf16.msra.mxu1 %v1641_v28  ;;  %v1565_v45 = vmax.f32 %v1397_v30, 0.0  ;;  %v3652_v28 = vld [vmem:[%s4681_s3 + $0x180] ss:$16 sps:$4 sm:$0xff]  }
 0x1cd   : > { %v1403_v43 = vadd.f32 %v1402_v40, %v793_v32  ;;  %v1566_v49 = vmax.f32 %v1399_v34, 0.0 }
 0x1ce   : > { %v1567_v26 = vmax.f32 %v1401_v38, 0.0  ;;  %v828_v38 = vpop.permute.xlu0 %827 }
 0x1cf   : > { %v1568_v46 = vmax.f32 %v1403_v43, 0.0  ;;  %2356 = vmatmul.mubr.bf16.gmra.mrb[36].mxu1 %v3643_v36 }
 0x1d0   : > { %v1643_v47 = vpack.c.bf16 %v1567_v26, %v1565_v45  ;;  %2365 = vmatprep.mubr.bf16.mxu1 %v3644_v41  ;;  %v833_v26 = vpop.permute.xlu1 %832 }
 0x1d1   : > { %v1644_v48 = vpack.c.bf16 %v1568_v46, %v1566_v49  ;;  %v1406_v50 = vpop.f32.mrb[104].mxu0 }
 0x1d2   : > { %v1407_v51 = vadd.f32 %v1406_v50, %v798_v27  ;;  %v1408_v52 = vpop.f32.mrb[105].mxu0  ;;  %v3656_v50 = vld [vmem:[%s4681_s3 + $0x1c4] ss:$16 sps:$4 sm:$0xff]  }
 0x1d3   : > { %v1409_v55 = vadd.f32 %v1408_v52, %v798_v27  ;;  %v1410_v56 = vpop.f32.mrb[106].mxu0  ;;  %2444 = vmatprep.subr.bf16.mxu1 %v1644_v48 }
 0x1d4   : > { %v1411_v58 = vadd.f32 %v1410_v56, %v803_v54  ;;  %v1412_v59 = vpop.f32.mrb[107].mxu0  ;;  %2445 = vmatpush1.bf16.msra.mxu1 %v1643_v47  ;;  %v1569_v31 = vmax.f32 %v1407_v51, 0.0  ;;  %v3655_v47 = vld [vmem:[%s4681_s3 + $0x1a0] ss:$16 sps:$4 sm:$0xff]  }
 0x1d5   : > { %v1413_v61 = vadd.f32 %v1412_v59, %v803_v54  ;;  %v1570_v53 = vmax.f32 %v1409_v55, 0.0 }
 0x1d6   : > { %v1571_v62 = vmax.f32 %v1411_v58, 0.0  ;;  %v838_v58 = vpop.permute.xlu0 %837 }
 0x1d7   : > { %v1572_v63 = vmax.f32 %v1413_v61, 0.0  ;;  %2366 = vmatmul.mubr.bf16.gmra.mrb[40].mxu1 %v3646_v57 }
 0x1d8   : > { %v1645_v33 = vpack.c.bf16 %v1571_v62, %v1569_v31  ;;  %2375 = vmatprep.mubr.bf16.mxu1 %v3647_v60  ;;  %v843_v62 = vpop.permute.xlu1 %842 }
 0x1d9   : > { %v1646_v2 = vpack.c.bf16 %v1572_v63, %v1570_v53  ;;  %v1416_v3 = vpop.f32.mrb[108].mxu0 }
 0x1da   : > { %v1417_v4 = vadd.f32 %v1416_v3, %v808_v1  ;;  %v1418_v5 = vpop.f32.mrb[109].mxu0  ;;  %v3659_v3 = vld [vmem:[%s4681_s3 + $0x1e4] ss:$16 sps:$4 sm:$0xff]  }
 0x1db   : > { %v1419_v7 = vadd.f32 %v1418_v5, %v808_v1  ;;  %v1420_v8 = vpop.f32.mrb[110].mxu0  ;;  %2446 = vmatprep.subr.bf16.mxu1 %v1646_v2 }
 0x1dc   : > { %v1421_v10 = vadd.f32 %v1420_v8, %v813_v6  ;;  %v1422_v11 = vpop.f32.mrb[111].mxu0  ;;  %2447 = vmatpush1.bf16.msra.mxu1 %v1645_v33  ;;  %v1573_v13 = vmax.f32 %v1417_v4, 0.0  ;;  %v3658_v33 = vld [vmem:[%s4681_s3 + $0x1c0] ss:$16 sps:$4 sm:$0xff]  }
 0x1dd   : > { %v1423_v37 = vadd.f32 %v1422_v11, %v813_v6  ;;  %v1574_v15 = vmax.f32 %v1419_v7, 0.0 }
 0x1de   : > { %v1575_v14 = vmax.f32 %v1421_v10, 0.0  ;;  %v848_v10 = vpop.permute.xlu0 %847 }
 0x1df   : > { %v1576_v17 = vmax.f32 %v1423_v37, 0.0  ;;  %2376 = vmatmul.mubr.bf16.gmra.mrb[44].mxu1 %v3649_v9 }
 0x1e0   : > { %v1647_v39 = vpack.c.bf16 %v1575_v14, %v1573_v13  ;;  %2385 = vmatprep.mubr.bf16.mxu1 %v3650_v12  ;;  %v853_v14 = vpop.permute.xlu1 %852 }
 0x1e1   : > { %v1648_v19 = vpack.c.bf16 %v1576_v17, %v1574_v15  ;;  %v1426_v20 = vpop.f32.mrb[112].mxu0 }
 0x1e2   : > { %v1427_v22 = vadd.f32 %v1426_v20, %v818_v18  ;;  %v1428_v23 = vpop.f32.mrb[113].mxu0  ;;  %v3664_v20 = vld [vmem:[%s4681_s3 + $0xc] ss:$16 sps:$4 sm:$0xff]  }
 0x1e3   : > { %v1429_v16 = vadd.f32 %v1428_v23, %v818_v18  ;;  %v1430_v25 = vpop.f32.mrb[114].mxu0  ;;  %2448 = vmatprep.subr.bf16.mxu1 %v1648_v19 }
 0x1e4   : > { %v1431_v42 = vadd.f32 %v1430_v25, %v823_v24  ;;  %v1432_v21 = vpop.f32.mrb[115].mxu0  ;;  %2449 = vmatpush1.bf16.msra.mxu1 %v1647_v39  ;;  %v1577_v44 = vmax.f32 %v1427_v22, 0.0  ;;  %v3661_v39 = vld [vmem:[%s4681_s3 + $0x1e0] ss:$16 sps:$4 sm:$0xff]  }
 0x1e5   : > { %v1433_v30 = vadd.f32 %v1432_v21, %v823_v24  ;;  %v1578_v34 = vmax.f32 %v1429_v16, 0.0  ;;  %v3662_v21 = vld [vmem:[%s4681_s3 + $0x8] ss:$16 sps:$4 sm:$0xff]  }
 0x1e6   : > { %v1579_v32 = vmax.f32 %v1431_v42, 0.0 }
 0x1e7   : > { %v1580_v35 = vmax.f32 %v1433_v30, 0.0  ;;  %2386 = vmatmul.mubr.bf16.gmra.mrb[48].mxu1 %v3652_v28  ;;  %v3667_v30 = vld [vmem:[%s4681_s3 + $0x28] ss:$16 sps:$4 sm:$0xff]  }
 0x1e8   : > { %v1649_v36 = vpack.c.bf16 %v1579_v32, %v1577_v44  ;;  %2395 = vmatprep.mubr.bf16.mxu1 %v3653_v29  ;;  %v3665_v29 = vld [vmem:[%s4681_s3 + $0x2c] ss:$16 sps:$4 sm:$0xff]   ;;  %v3670_v32 = vld [vmem:[%s4681_s3 + $0x48] ss:$16 sps:$4 sm:$0xff]  }
 0x1e9   : > { %v1650_v40 = vpack.c.bf16 %v1580_v35, %v1578_v34  ;;  %v1436_v41 = vpop.f32.mrb[116].mxu0  ;;  %v3668_v44 = vld [vmem:[%s4681_s3 + $0x4c] ss:$16 sps:$4 sm:$0xff]   ;;  %v3673_v35 = vld [vmem:[%s4681_s3 + $0x68] ss:$16 sps:$4 sm:$0xff]  }
 0x1ea   : > { %v1437_v43 = vadd.f32 %v1436_v41, %v828_v38  ;;  %v1438_v45 = vpop.f32.mrb[117].mxu0  ;;  %v3671_v34 = vld [vmem:[%s4681_s3 + $0x6c] ss:$16 sps:$4 sm:$0xff]   ;;  %v3679_v41 = vld [vmem:[%s4681_s3 + $0xa8] ss:$16 sps:$4 sm:$0xff]  }
 0x1eb   : > { %v1439_v49 = vadd.f32 %v1438_v45, %v828_v38  ;;  %v1440_v46 = vpop.f32.mrb[118].mxu0  ;;  %2450 = vmatprep.subr.bf16.mxu1 %v1650_v40  ;;  %v3676_v38 = vld [vmem:[%s4681_s3 + $0x88] ss:$16 sps:$4 sm:$0xff]   ;;  %v3677_v40 = vld [vmem:[%s4681_s3 + $0xac] ss:$16 sps:$4 sm:$0xff]  }
 0x1ec   : > { %v1441_v27 = vadd.f32 %v1440_v46, %v833_v26  ;;  %v1442_v48 = vpop.f32.mrb[119].mxu0  ;;  %2451 = vmatpush1.bf16.msra.mxu1 %v1649_v36  ;;  %v1581_v52 = vmax.f32 %v1437_v43, 0.0  ;;  %v3674_v36 = vld [vmem:[%s4681_s3 + $0x8c] ss:$16 sps:$4 sm:$0xff]   ;;  %v3682_v45 = vld [vmem:[%s4681_s3 + $0xc8] ss:$16 sps:$4 sm:$0xff]  }
 0x1ed   : > { %v1443_v51 = vadd.f32 %v1442_v48, %v833_v26  ;;  %v1582_v55 = vmax.f32 %v1439_v49, 0.0  ;;  %v3680_v43 = vld [vmem:[%s4681_s3 + $0xcc] ss:$16 sps:$4 sm:$0xff]   ;;  %v3685_v49 = vld [vmem:[%s4681_s3 + $0xe8] ss:$16 sps:$4 sm:$0xff]  }
 0x1ee   : > { %v1583_v54 = vmax.f32 %v1441_v27, 0.0  ;;  %v3683_v26 = vld [vmem:[%s4681_s3 + $0xec] ss:$16 sps:$4 sm:$0xff]   ;;  %v3691_v48 = vld [vmem:[%s4681_s3 + $0x128] ss:$16 sps:$4 sm:$0xff]  }
 0x1ef   : > { %v1584_v56 = vmax.f32 %v1443_v51, 0.0  ;;  %2396 = vmatmul.mubr.bf16.gmra.mrb[52].mxu1 %v3655_v47  ;;  %v3686_v46 = vld [vmem:[%s4681_s3 + $0x10c] ss:$16 sps:$4 sm:$0xff]   ;;  %v3688_v47 = vld [vmem:[%s4681_s3 + $0x108] ss:$16 sps:$4 sm:$0xff]  }
 0x1f0   : > { %v1651_v57 = vpack.c.bf16 %v1583_v54, %v1581_v52  ;;  %2405 = vmatprep.mubr.bf16.mxu1 %v3656_v50  ;;  %v3689_v27 = vld [vmem:[%s4681_s3 + $0x12c] ss:$16 sps:$4 sm:$0xff]   ;;  %v3694_v51 = vld [vmem:[%s4681_s3 + $0x148] ss:$16 sps:$4 sm:$0xff]  }
 0x1f1   : > { %v1652_v59 = vpack.c.bf16 %v1584_v56, %v1582_v55  ;;  %v1446_v60 = vpop.f32.mrb[120].mxu0  ;;  %v3692_v50 = vld [vmem:[%s4681_s3 + $0x14c] ss:$16 sps:$4 sm:$0xff]   ;;  %v3697_v54 = vld [vmem:[%s4681_s3 + $0x168] ss:$16 sps:$4 sm:$0xff]  }
 0x1f2   : > { %v1447_v61 = vadd.f32 %v1446_v60, %v838_v58  ;;  %v1448_v31 = vpop.f32.mrb[121].mxu0  ;;  %v3695_v52 = vld [vmem:[%s4681_s3 + $0x16c] ss:$16 sps:$4 sm:$0xff]   ;;  %v3700_v56 = vld [vmem:[%s4681_s3 + $0x188] ss:$16 sps:$4 sm:$0xff]  }
 0x1f3   : > { %v1449_v53 = vadd.f32 %v1448_v31, %v838_v58  ;;  %v1450_v63 = vpop.f32.mrb[122].mxu0  ;;  %2452 = vmatprep.subr.bf16.mxu1 %v1652_v59  ;;  %v3698_v55 = vld [vmem:[%s4681_s3 + $0x18c] ss:$16 sps:$4 sm:$0xff]   ;;  %v3703_v58 = vld [vmem:[%s4681_s3 + $0x1a8] ss:$16 sps:$4 sm:$0xff]  }
 0x1f4   : > { %v1451_v1 = vadd.f32 %v1450_v63, %v843_v62  ;;  %v1452_v2 = vpop.f32.mrb[123].mxu0  ;;  %2453 = vmatpush1.bf16.msra.mxu1 %v1651_v57  ;;  %v1585_v5 = vmax.f32 %v1447_v61, 0.0  ;;  %v3701_v57 = vld [vmem:[%s4681_s3 + $0x1ac] ss:$16 sps:$4 sm:$0xff]   ;;  %v3706_v60 = vld [vmem:[%s4681_s3 + $0x1c8] ss:$16 sps:$4 sm:$0xff]  }
 0x1f5   : > { %v1453_v4 = vadd.f32 %v1452_v2, %v843_v62  ;;  %v1586_v7 = vmax.f32 %v1449_v53, 0.0  ;;  %v3704_v59 = vld [vmem:[%s4681_s3 + $0x1cc] ss:$16 sps:$4 sm:$0xff]   ;;  %v3709_v31 = vld [vmem:[%s4681_s3 + $0x1e8] ss:$16 sps:$4 sm:$0xff]   ;;  %v1756_v62 = vpop.permute.xlu0 %1755 }
 0x1f6   : > { %v1587_v6 = vmax.f32 %v1451_v1, 0.0  ;;  %v3707_v61 = vld [vmem:[%s4681_s3 + $0x1ec] ss:$16 sps:$4 sm:$0xff]   ;;  %v1761_v1 = vpop.permute.xlu1 %1760 }
 0x1f7   : > { %v1588_v8 = vmax.f32 %v1453_v4, 0.0  ;;  %2406 = vmatmul.mubr.bf16.gmra.mrb[56].mxu1 %v3658_v33 }
 0x1f8   : > { %v1653_v9 = vpack.c.bf16 %v1587_v6, %v1585_v5  ;;  %2415 = vmatprep.mubr.bf16.mxu1 %v3659_v3  ;;  %v3712_v6 = vld [vmem:[%s4683_s5 + $0x4] ss:$8 sps:$4 sm:$0xff]  }
 0x1f9   : > { %v1654_v11 = vpack.c.bf16 %v1588_v8, %v1586_v7  ;;  %v1456_v12 = vpop.f32.mrb[124].mxu0  ;;  %2939 = vmatprep.mubr.bf16.mxu0 %v3712_v6 }
 0x1fa   : > { %v1457_v37 = vadd.f32 %v1456_v12, %v848_v10  ;;  %v1458_v13 = vpop.f32.mrb[125].mxu0  ;;  %v1766_v12 = vpop.permute.xlu0 %1765 }
 0x1fb   : > { %v1459_v15 = vadd.f32 %v1458_v13, %v848_v10  ;;  %v1460_v17 = vpop.f32.mrb[126].mxu0  ;;  %2454 = vmatprep.subr.bf16.mxu1 %v1654_v11 }
 0x1fc   : > { %v1461_v18 = vadd.f32 %v1460_v17, %v853_v14  ;;  %v1462_v19 = vpop.f32.mrb[127].mxu0  ;;  %2455 = vmatpush1.bf16.msra.mxu1 %v1653_v9  ;;  %v1589_v23 = vmax.f32 %v1457_v37, 0.0  ;;  %v1771_v17 = vpop.permute.xlu1 %1770 }
 0x1fd   : > { %v1463_v22 = vadd.f32 %v1462_v19, %v853_v14  ;;  %v1590_v16 = vmax.f32 %v1459_v15, 0.0 }
 0x1fe   : > { %v1591_v24 = vmax.f32 %v1461_v18, 0.0 }
 0x1ff   : > { %v1592_v25 = vmax.f32 %v1463_v22, 0.0  ;;  %2416 = vmatmul.mubr.bf16.gmra.mrb[60].mxu1 %v3661_v39 }
 0x200   : > { %v1655_v28 = vpack.c.bf16 %v1591_v24, %v1589_v23  ;;  %2458 = vmatprep.mubr.bf16.mxu1 %v3664_v20 }
 0x201   : > { %v1656_v42 = vpack.c.bf16 %v1592_v25, %v1590_v16 }
 0x203   : > { %2456 = vmatprep.subr.bf16.mxu1 %v1656_v42  ;;  %v1776_v42 = vpop.permute.xlu0 %1775 }
 0x204   : > { %2457 = vmatpush1.bf16.msra.mxu1 %v1655_v28 }
 0x207   : > { %2459 = vmatmul.mubr.bf16.vlgmr.msra.gmra.mrb[0].mxu1 %v3662_v21 }
 0x208   : > { %2468 = vmatprep.mubr.bf16.mxu1 %v3665_v29 }
 0x20f   : > { %2469 = vmatmul.mubr.bf16.gmra.mrb[4].mxu1 %v3667_v30 }
 0x210   : > { %2478 = vmatprep.mubr.bf16.mxu1 %v3668_v44 }
 0x217   : > { %2479 = vmatmul.mubr.bf16.gmra.mrb[8].mxu1 %v3670_v32  ;;  %v1781_v32 = vpop.permute.xlu1 %1780 }
 0x218   : > { %2488 = vmatprep.mubr.bf16.mxu1 %v3671_v34 }
 0x21f   : > { %2489 = vmatmul.mubr.bf16.gmra.mrb[12].mxu1 %v3673_v35 }
 0x220   : > { %2498 = vmatprep.mubr.bf16.mxu1 %v3674_v36 }
 0x227   : > { %2499 = vmatmul.mubr.bf16.gmra.mrb[16].mxu1 %v3676_v38 }
 0x228   : > { %2508 = vmatprep.mubr.bf16.mxu1 %v3677_v40 }
 0x22f   : > { %2509 = vmatmul.mubr.bf16.gmra.mrb[20].mxu1 %v3679_v41 }
 0x230   : > { %2518 = vmatprep.mubr.bf16.mxu1 %v3680_v43 }
 0x237   : > { %2519 = vmatmul.mubr.bf16.gmra.mrb[24].mxu1 %v3682_v45 }
 0x238   : > { %2528 = vmatprep.mubr.bf16.mxu1 %v3683_v26 }
 0x23f   : > { %2529 = vmatmul.mubr.bf16.gmra.mrb[28].mxu1 %v3685_v49 }
 0x240   : > { %2538 = vmatprep.mubr.bf16.mxu1 %v3686_v46  ;;  %v1786_v46 = vpop.permute.xlu0 %1785 }
 0x247   : > { %2539 = vmatmul.mubr.bf16.gmra.mrb[32].mxu1 %v3688_v47 }
 0x248   : > { %2548 = vmatprep.mubr.bf16.mxu1 %v3689_v27 }
 0x24f   : > { %2549 = vmatmul.mubr.bf16.gmra.mrb[36].mxu1 %v3691_v48 }
 0x250   : > { %2558 = vmatprep.mubr.bf16.mxu1 %v3692_v50 }
 0x257   : > { %2559 = vmatmul.mubr.bf16.gmra.mrb[40].mxu1 %v3694_v51  ;;  %v1791_v51 = vpop.permute.xlu1 %1790 }
 0x258   : > { %2568 = vmatprep.mubr.bf16.mxu1 %v3695_v52 }
 0x25f   : > { %2569 = vmatmul.mubr.bf16.gmra.mrb[44].mxu1 %v3697_v54 }
 0x260   : > { %2578 = vmatprep.mubr.bf16.mxu1 %v3698_v55 }
 0x267   : > { %2579 = vmatmul.mubr.bf16.gmra.mrb[48].mxu1 %v3700_v56 }
 0x268   : > { %2588 = vmatprep.mubr.bf16.mxu1 %v3701_v57 }
 0x26f   : > { %2589 = vmatmul.mubr.bf16.gmra.mrb[52].mxu1 %v3703_v58 }
 0x270   : > { %2598 = vmatprep.mubr.bf16.mxu1 %v3704_v59 }
 0x277   : > { %2599 = vmatmul.mubr.bf16.gmra.mrb[56].mxu1 %v3706_v60 }
 0x278   : > { %2608 = vmatprep.mubr.bf16.mxu1 %v3707_v61 }
 0x27f   : > { %2609 = vmatmul.mubr.bf16.gmra.mrb[60].mxu1 %v3709_v31 }
 0x280   : > { %3107 = vmatprep.mubr.bf16.mxu1 %v3814_v0 }
 0x2da   : > { %v2460_v53 = vpop.f32.mrb[0].mxu1 }
 0x2db   : > { %v3396_v63 = vadd.f32 %v2460_v53, %v1756_v62  ;;  %v2462_v33 = vpop.f32.mrb[1].mxu1 }
 0x2dc   : > { %v3397_v2 = vadd.f32 %v2462_v33, %v1756_v62  ;;  %v2464_v3 = vpop.f32.mrb[2].mxu1  ;;  %v1796_v62 = vpop.permute.xlu0 %1795 }
 0x2dd   : > { %v3398_v4 = vadd.f32 %v2464_v3, %v1761_v1  ;;  %v2466_v5 = vpop.f32.mrb[3].mxu1  ;;  %v2619_v8 = vmax.f32 %v3396_v63, 0.0 }
 0x2de   : > { %v3399_v7 = vadd.f32 %v2466_v5, %v1761_v1  ;;  %v2620_v10 = vmax.f32 %v3397_v2, 0.0  ;;  %v1801_v2 = vpop.permute.xlu1 %1800 }
 0x2df   : > { %v2621_v9 = vmax.f32 %v3398_v4, 0.0 }
 0x2e0   : > { %v2622_v11 = vmax.f32 %v3399_v7, 0.0 }
 0x2e1   : > { %v2683_v0 = vpack.c.bf16 %v2621_v9, %v2619_v8 }
 0x2e2   : > { %v2684_v37 = vpack.c.bf16 %v2622_v11, %v2620_v10  ;;  %v2470_v13 = vpop.f32.mrb[4].mxu1 }
 0x2e3   : > { %v3400_v14 = vadd.f32 %v2470_v13, %v1766_v12  ;;  %v2472_v15 = vpop.f32.mrb[5].mxu1 }
 0x2e4   : > { %v3401_v39 = vadd.f32 %v2472_v15, %v1766_v12  ;;  %v2474_v18 = vpop.f32.mrb[6].mxu1  ;;  %2907 = vmatprep.subr.bf16.mxu0 %v2684_v37  ;;  %v1806_v12 = vpop.permute.xlu0 %1805 }
 0x2e5   : > { %v3402_v19 = vadd.f32 %v2474_v18, %v1771_v17  ;;  %v2476_v20 = vpop.f32.mrb[7].mxu1  ;;  %2908 = vmatpush1.bf16.msra.mxu0 %v2683_v0  ;;  %v2623_v23 = vmax.f32 %v3400_v14, 0.0 }
 0x2e6   : > { %v3403_v22 = vadd.f32 %v2476_v20, %v1771_v17  ;;  %v2624_v16 = vmax.f32 %v3401_v39, 0.0  ;;  %v1811_v17 = vpop.permute.xlu1 %1810 }
 0x2e7   : > { %v2625_v24 = vmax.f32 %v3402_v19, 0.0 }
 0x2e8   : > { %v2626_v25 = vmax.f32 %v3403_v22, 0.0 }
 0x2e9   : > { %v2685_v28 = vpack.c.bf16 %v2625_v24, %v2623_v23 }
 0x2ea   : > { %v2686_v21 = vpack.c.bf16 %v2626_v25, %v2624_v16  ;;  %v2480_v29 = vpop.f32.mrb[8].mxu1 }
 0x2eb   : > { %v3404_v30 = vadd.f32 %v2480_v29, %v1776_v42  ;;  %v2482_v44 = vpop.f32.mrb[9].mxu1 }
 0x2ec   : > { %v3405_v34 = vadd.f32 %v2482_v44, %v1776_v42  ;;  %v2484_v35 = vpop.f32.mrb[10].mxu1  ;;  %2909 = vmatprep.subr.bf16.mxu0 %v2686_v21  ;;  %v1816_v42 = vpop.permute.xlu0 %1815 }
 0x2ed   : > { %v3406_v36 = vadd.f32 %v2484_v35, %v1781_v32  ;;  %v2486_v38 = vpop.f32.mrb[11].mxu1  ;;  %2910 = vmatpush1.bf16.msra.mxu0 %v2685_v28  ;;  %v2627_v41 = vmax.f32 %v3404_v30, 0.0 }
 0x2ee   : > { %v3407_v40 = vadd.f32 %v2486_v38, %v1781_v32  ;;  %v2628_v45 = vmax.f32 %v3405_v34, 0.0  ;;  %v1821_v32 = vpop.permute.xlu1 %1820 }
 0x2ef   : > { %v2629_v43 = vmax.f32 %v3406_v36, 0.0 }
 0x2f0   : > { %v2630_v26 = vmax.f32 %v3407_v40, 0.0 }
 0x2f1   : > { %v2687_v49 = vpack.c.bf16 %v2629_v43, %v2627_v41 }
 0x2f2   : > { %v2688_v47 = vpack.c.bf16 %v2630_v26, %v2628_v45  ;;  %v2490_v27 = vpop.f32.mrb[12].mxu1 }
 0x2f3   : > { %v3408_v48 = vadd.f32 %v2490_v27, %v1786_v46  ;;  %v2492_v50 = vpop.f32.mrb[13].mxu1 }
 0x2f4   : > { %v3409_v52 = vadd.f32 %v2492_v50, %v1786_v46  ;;  %v2494_v54 = vpop.f32.mrb[14].mxu1  ;;  %2911 = vmatprep.subr.bf16.mxu0 %v2688_v47  ;;  %v1826_v46 = vpop.permute.xlu0 %1825 }
 0x2f5   : > { %v3410_v55 = vadd.f32 %v2494_v54, %v1791_v51  ;;  %v2496_v56 = vpop.f32.mrb[15].mxu1  ;;  %2912 = vmatpush1.bf16.msra.mxu0 %v2687_v49  ;;  %v2631_v58 = vmax.f32 %v3408_v48, 0.0 }
 0x2f6   : > { %v3411_v57 = vadd.f32 %v2496_v56, %v1791_v51  ;;  %v2632_v60 = vmax.f32 %v3409_v52, 0.0  ;;  %v1831_v51 = vpop.permute.xlu1 %1830 }
 0x2f7   : > { %v2633_v59 = vmax.f32 %v3410_v55, 0.0 }
 0x2f8   : > { %v2634_v61 = vmax.f32 %v3411_v57, 0.0 }
 0x2f9   : > { %v2689_v31 = vpack.c.bf16 %v2633_v59, %v2631_v58 }
 0x2fa   : > { %v2690_v53 = vpack.c.bf16 %v2634_v61, %v2632_v60  ;;  %v2500_v63 = vpop.f32.mrb[16].mxu1 }
 0x2fb   : > { %v3412_v33 = vadd.f32 %v2500_v63, %v1796_v62  ;;  %v2502_v1 = vpop.f32.mrb[17].mxu1 }
 0x2fc   : > { %v3413_v3 = vadd.f32 %v2502_v1, %v1796_v62  ;;  %v2504_v4 = vpop.f32.mrb[18].mxu1  ;;  %2913 = vmatprep.subr.bf16.mxu0 %v2690_v53  ;;  %v1836_v62 = vpop.permute.xlu0 %1835 }
 0x2fd   : > { %v3414_v5 = vadd.f32 %v2504_v4, %v1801_v2  ;;  %v2506_v6 = vpop.f32.mrb[19].mxu1  ;;  %2914 = vmatpush1.bf16.msra.mxu0 %v2689_v31  ;;  %v2635_v8 = vmax.f32 %v3412_v33, 0.0 }
 0x2fe   : > { %v3415_v7 = vadd.f32 %v2506_v6, %v1801_v2  ;;  %v2636_v10 = vmax.f32 %v3413_v3, 0.0  ;;  %v1841_v2 = vpop.permute.xlu1 %1840 }
 0x2ff   : > { %v2637_v9 = vmax.f32 %v3414_v5, 0.0 }
 0x300   : > { %v2638_v11 = vmax.f32 %v3415_v7, 0.0 }
 0x301   : > { %v2691_v0 = vpack.c.bf16 %v2637_v9, %v2635_v8 }
 0x302   : > { %v2692_v37 = vpack.c.bf16 %v2638_v11, %v2636_v10  ;;  %v2510_v13 = vpop.f32.mrb[20].mxu1 }
 0x303   : > { %v3416_v14 = vadd.f32 %v2510_v13, %v1806_v12  ;;  %v2512_v15 = vpop.f32.mrb[21].mxu1 }
 0x304   : > { %v3417_v39 = vadd.f32 %v2512_v15, %v1806_v12  ;;  %v2514_v18 = vpop.f32.mrb[22].mxu1  ;;  %2915 = vmatprep.subr.bf16.mxu0 %v2692_v37  ;;  %v1846_v12 = vpop.permute.xlu0 %1845 }
 0x305   : > { %v3418_v19 = vadd.f32 %v2514_v18, %v1811_v17  ;;  %v2516_v20 = vpop.f32.mrb[23].mxu1  ;;  %2916 = vmatpush1.bf16.msra.mxu0 %v2691_v0  ;;  %v2639_v23 = vmax.f32 %v3416_v14, 0.0 }
 0x306   : > { %v3419_v22 = vadd.f32 %v2516_v20, %v1811_v17  ;;  %v2640_v16 = vmax.f32 %v3417_v39, 0.0  ;;  %v1851_v17 = vpop.permute.xlu1 %1850 }
 0x307   : > { %v2641_v24 = vmax.f32 %v3418_v19, 0.0 }
 0x308   : > { %v2642_v25 = vmax.f32 %v3419_v22, 0.0 }
 0x309   : > { %v2693_v28 = vpack.c.bf16 %v2641_v24, %v2639_v23 }
 0x30a   : > { %v2694_v21 = vpack.c.bf16 %v2642_v25, %v2640_v16  ;;  %v2520_v29 = vpop.f32.mrb[24].mxu1 }
 0x30b   : > { %v3420_v30 = vadd.f32 %v2520_v29, %v1816_v42  ;;  %v2522_v44 = vpop.f32.mrb[25].mxu1 }
 0x30c   : > { %v3421_v34 = vadd.f32 %v2522_v44, %v1816_v42  ;;  %v2524_v35 = vpop.f32.mrb[26].mxu1  ;;  %2917 = vmatprep.subr.bf16.mxu0 %v2694_v21  ;;  %v1856_v42 = vpop.permute.xlu0 %1855 }
 0x30d   : > { %v3422_v36 = vadd.f32 %v2524_v35, %v1821_v32  ;;  %v2526_v38 = vpop.f32.mrb[27].mxu1  ;;  %2918 = vmatpush1.bf16.msra.mxu0 %v2693_v28  ;;  %v2643_v41 = vmax.f32 %v3420_v30, 0.0 }
 0x30e   : > { %v3423_v40 = vadd.f32 %v2526_v38, %v1821_v32  ;;  %v2644_v45 = vmax.f32 %v3421_v34, 0.0  ;;  %v1861_v32 = vpop.permute.xlu1 %1860 }
 0x30f   : > { %v2645_v43 = vmax.f32 %v3422_v36, 0.0 }
 0x310   : > { %v2646_v26 = vmax.f32 %v3423_v40, 0.0 }
 0x311   : > { %v2695_v49 = vpack.c.bf16 %v2645_v43, %v2643_v41 }
 0x312   : > { %v2696_v47 = vpack.c.bf16 %v2646_v26, %v2644_v45  ;;  %v2530_v27 = vpop.f32.mrb[28].mxu1 }
 0x313   : > { %v3424_v48 = vadd.f32 %v2530_v27, %v1826_v46  ;;  %v2532_v50 = vpop.f32.mrb[29].mxu1 }
 0x314   : > { %v3425_v52 = vadd.f32 %v2532_v50, %v1826_v46  ;;  %v2534_v54 = vpop.f32.mrb[30].mxu1  ;;  %2919 = vmatprep.subr.bf16.mxu0 %v2696_v47  ;;  %v1866_v46 = vpop.permute.xlu0 %1865 }
 0x315   : > { %v3426_v55 = vadd.f32 %v2534_v54, %v1831_v51  ;;  %v2536_v56 = vpop.f32.mrb[31].mxu1  ;;  %2920 = vmatpush1.bf16.msra.mxu0 %v2695_v49  ;;  %v2647_v58 = vmax.f32 %v3424_v48, 0.0 }
 0x316   : > { %v3427_v57 = vadd.f32 %v2536_v56, %v1831_v51  ;;  %v2648_v60 = vmax.f32 %v3425_v52, 0.0  ;;  %v1871_v51 = vpop.permute.xlu1 %1870 }
 0x317   : > { %v2649_v59 = vmax.f32 %v3426_v55, 0.0 }
 0x318   : > { %v2650_v61 = vmax.f32 %v3427_v57, 0.0 }
 0x319   : > { %v2697_v31 = vpack.c.bf16 %v2649_v59, %v2647_v58 }
 0x31a   : > { %v2698_v53 = vpack.c.bf16 %v2650_v61, %v2648_v60  ;;  %v2540_v63 = vpop.f32.mrb[32].mxu1 }
 0x31b   : > { %v3428_v33 = vadd.f32 %v2540_v63, %v1836_v62  ;;  %v2542_v1 = vpop.f32.mrb[33].mxu1 }
 0x31c   : > { %v3429_v3 = vadd.f32 %v2542_v1, %v1836_v62  ;;  %v2544_v4 = vpop.f32.mrb[34].mxu1  ;;  %2921 = vmatprep.subr.bf16.mxu0 %v2698_v53  ;;  %v1876_v62 = vpop.permute.xlu0 %1875 }
 0x31d   : > { %v3430_v5 = vadd.f32 %v2544_v4, %v1841_v2  ;;  %v2546_v6 = vpop.f32.mrb[35].mxu1  ;;  %2922 = vmatpush1.bf16.msra.mxu0 %v2697_v31  ;;  %v2651_v8 = vmax.f32 %v3428_v33, 0.0 }
 0x31e   : > { %v3431_v7 = vadd.f32 %v2546_v6, %v1841_v2  ;;  %v2652_v10 = vmax.f32 %v3429_v3, 0.0  ;;  %v1881_v2 = vpop.permute.xlu1 %1880 }
 0x31f   : > { %v2653_v9 = vmax.f32 %v3430_v5, 0.0 }
 0x320   : > { %v2654_v11 = vmax.f32 %v3431_v7, 0.0 }
 0x321   : > { %v2699_v0 = vpack.c.bf16 %v2653_v9, %v2651_v8 }
 0x322   : > { %v2700_v37 = vpack.c.bf16 %v2654_v11, %v2652_v10  ;;  %v2550_v13 = vpop.f32.mrb[36].mxu1 }
 0x323   : > { %v3432_v14 = vadd.f32 %v2550_v13, %v1846_v12  ;;  %v2552_v15 = vpop.f32.mrb[37].mxu1 }
 0x324   : > { %v3433_v39 = vadd.f32 %v2552_v15, %v1846_v12  ;;  %v2554_v18 = vpop.f32.mrb[38].mxu1  ;;  %2923 = vmatprep.subr.bf16.mxu0 %v2700_v37  ;;  %v1886_v12 = vpop.permute.xlu0 %1885 }
 0x325   : > { %v3434_v19 = vadd.f32 %v2554_v18, %v1851_v17  ;;  %v2556_v20 = vpop.f32.mrb[39].mxu1  ;;  %2924 = vmatpush1.bf16.msra.mxu0 %v2699_v0  ;;  %v2655_v23 = vmax.f32 %v3432_v14, 0.0 }
 0x326   : > { %v3435_v22 = vadd.f32 %v2556_v20, %v1851_v17  ;;  %v2656_v16 = vmax.f32 %v3433_v39, 0.0  ;;  %v1891_v17 = vpop.permute.xlu1 %1890 }
 0x327   : > { %v2657_v24 = vmax.f32 %v3434_v19, 0.0 }
 0x328   : > { %v2658_v25 = vmax.f32 %v3435_v22, 0.0 }
 0x329   : > { %v2701_v28 = vpack.c.bf16 %v2657_v24, %v2655_v23 }
 0x32a   : > { %v2702_v21 = vpack.c.bf16 %v2658_v25, %v2656_v16  ;;  %v2560_v29 = vpop.f32.mrb[40].mxu1 }
 0x32b   : > { %v3436_v30 = vadd.f32 %v2560_v29, %v1856_v42  ;;  %v2562_v44 = vpop.f32.mrb[41].mxu1 }
 0x32c   : > { %v3437_v34 = vadd.f32 %v2562_v44, %v1856_v42  ;;  %v2564_v35 = vpop.f32.mrb[42].mxu1  ;;  %2925 = vmatprep.subr.bf16.mxu0 %v2702_v21  ;;  %v1896_v42 = vpop.permute.xlu0 %1895 }
 0x32d   : > { %v3438_v36 = vadd.f32 %v2564_v35, %v1861_v32  ;;  %v2566_v38 = vpop.f32.mrb[43].mxu1  ;;  %2926 = vmatpush1.bf16.msra.mxu0 %v2701_v28  ;;  %v2659_v41 = vmax.f32 %v3436_v30, 0.0 }
 0x32e   : > { %v3439_v40 = vadd.f32 %v2566_v38, %v1861_v32  ;;  %v2660_v45 = vmax.f32 %v3437_v34, 0.0  ;;  %v1901_v32 = vpop.permute.xlu1 %1900 }
 0x32f   : > { %v2661_v43 = vmax.f32 %v3438_v36, 0.0 }
 0x330   : > { %v2662_v26 = vmax.f32 %v3439_v40, 0.0 }
 0x331   : > { %v2703_v49 = vpack.c.bf16 %v2661_v43, %v2659_v41 }
 0x332   : > { %v2704_v47 = vpack.c.bf16 %v2662_v26, %v2660_v45  ;;  %v2570_v27 = vpop.f32.mrb[44].mxu1 }
 0x333   : > { %v3440_v48 = vadd.f32 %v2570_v27, %v1866_v46  ;;  %v2572_v50 = vpop.f32.mrb[45].mxu1 }
 0x334   : > { %v3441_v52 = vadd.f32 %v2572_v50, %v1866_v46  ;;  %v2574_v54 = vpop.f32.mrb[46].mxu1  ;;  %2927 = vmatprep.subr.bf16.mxu0 %v2704_v47  ;;  %v1906_v46 = vpop.permute.xlu0 %1905 }
 0x335   : > { %v3442_v55 = vadd.f32 %v2574_v54, %v1871_v51  ;;  %v2576_v56 = vpop.f32.mrb[47].mxu1  ;;  %2928 = vmatpush1.bf16.msra.mxu0 %v2703_v49  ;;  %v2663_v58 = vmax.f32 %v3440_v48, 0.0 }
 0x336   : > { %v3443_v57 = vadd.f32 %v2576_v56, %v1871_v51  ;;  %v2664_v60 = vmax.f32 %v3441_v52, 0.0  ;;  %v1911_v51 = vpop.permute.xlu1 %1910 }
 0x337   : > { %v2665_v59 = vmax.f32 %v3442_v55, 0.0 }
 0x338   : > { %v2666_v61 = vmax.f32 %v3443_v57, 0.0 }
 0x339   : > { %v2705_v31 = vpack.c.bf16 %v2665_v59, %v2663_v58 }
 0x33a   : > { %v2706_v53 = vpack.c.bf16 %v2666_v61, %v2664_v60  ;;  %v2580_v63 = vpop.f32.mrb[48].mxu1 }
 0x33b   : > { %v3444_v33 = vadd.f32 %v2580_v63, %v1876_v62  ;;  %v2582_v1 = vpop.f32.mrb[49].mxu1  ;;  %v3713_v63 = vld [vmem:[%s4683_s5 + $0x14] ss:$8 sps:$4 sm:$0xff]  }
 0x33c   : > { %v3445_v3 = vadd.f32 %v2582_v1, %v1876_v62  ;;  %v2584_v4 = vpop.f32.mrb[50].mxu1  ;;  %2929 = vmatprep.subr.bf16.mxu0 %v2706_v53  ;;  %v3710_v53 = vld [vmem:[%s4683_s5] ss:$8 sps:$4 sm:$0xff]   ;;  %v3716_v1 = vld [vmem:[%s4683_s5 + $0x24] ss:$8 sps:$4 sm:$0xff]  }
 0x33d   : > { %v3446_v5 = vadd.f32 %v2584_v4, %v1881_v2  ;;  %v2586_v6 = vpop.f32.mrb[51].mxu1  ;;  %2930 = vmatpush1.bf16.msra.mxu0 %v2705_v31  ;;  %v2667_v8 = vmax.f32 %v3444_v33, 0.0  ;;  %v3715_v33 = vld [vmem:[%s4683_s5 + $0x10] ss:$8 sps:$4 sm:$0xff]  }
 0x33e   : > { %v3447_v7 = vadd.f32 %v2586_v6, %v1881_v2  ;;  %v2668_v10 = vmax.f32 %v3445_v3, 0.0  ;;  %v3718_v2 = vld [vmem:[%s4683_s5 + $0x20] ss:$8 sps:$4 sm:$0xff]   ;;  %v3719_v3 = vld [vmem:[%s4683_s5 + $0x34] ss:$8 sps:$4 sm:$0xff]  }
 0x33f   : > { %v2669_v9 = vmax.f32 %v3446_v5, 0.0  ;;  %v3721_v4 = vld [vmem:[%s4683_s5 + $0x30] ss:$8 sps:$4 sm:$0xff]   ;;  %v3722_v5 = vld [vmem:[%s4683_s5 + $0x44] ss:$8 sps:$4 sm:$0xff]  }
 0x340   : > { %v2670_v11 = vmax.f32 %v3447_v7, 0.0  ;;  %v3724_v6 = vld [vmem:[%s4683_s5 + $0x40] ss:$8 sps:$4 sm:$0xff]   ;;  %v3725_v7 = vld [vmem:[%s4683_s5 + $0x54] ss:$8 sps:$4 sm:$0xff]  }
 0x341   : > { %v2707_v0 = vpack.c.bf16 %v2669_v9, %v2667_v8  ;;  %v3727_v8 = vld [vmem:[%s4683_s5 + $0x50] ss:$8 sps:$4 sm:$0xff]   ;;  %v3728_v9 = vld [vmem:[%s4683_s5 + $0x64] ss:$8 sps:$4 sm:$0xff]  }
 0x342   : > { %v2708_v37 = vpack.c.bf16 %v2670_v11, %v2668_v10  ;;  %v2590_v13 = vpop.f32.mrb[52].mxu1  ;;  %v3730_v10 = vld [vmem:[%s4683_s5 + $0x60] ss:$8 sps:$4 sm:$0xff]   ;;  %v3731_v11 = vld [vmem:[%s4683_s5 + $0x74] ss:$8 sps:$4 sm:$0xff]  }
 0x343   : > { %v3448_v14 = vadd.f32 %v2590_v13, %v1886_v12  ;;  %v2592_v15 = vpop.f32.mrb[53].mxu1 }
 0x344   : > { %v3449_v39 = vadd.f32 %v2592_v15, %v1886_v12  ;;  %v2594_v18 = vpop.f32.mrb[54].mxu1  ;;  %2931 = vmatprep.subr.bf16.mxu0 %v2708_v37  ;;  %v2750_v12 = vpop.permute.xlu0 %2749 }
 0x345   : > { %v3450_v19 = vadd.f32 %v2594_v18, %v1891_v17  ;;  %v2596_v20 = vpop.f32.mrb[55].mxu1  ;;  %2932 = vmatpush1.bf16.msra.mxu0 %v2707_v0  ;;  %v2671_v23 = vmax.f32 %v3448_v14, 0.0  ;;  %v3733_v0 = vld [vmem:[%s4683_s5 + $0x70] ss:$8 sps:$4 sm:$0xff]   ;;  %v2755_v15 = vpop.permute.xlu1 %2754 }
 0x346   : > { %v3451_v22 = vadd.f32 %v2596_v20, %v1891_v17  ;;  %v2672_v16 = vmax.f32 %v3449_v39, 0.0 }
 0x347   : > { %v2673_v24 = vmax.f32 %v3450_v19, 0.0 }
 0x348   : > { %v2674_v25 = vmax.f32 %v3451_v22, 0.0 }
 0x349   : > { %v2709_v28 = vpack.c.bf16 %v2673_v24, %v2671_v23 }
 0x34a   : > { %v2710_v21 = vpack.c.bf16 %v2674_v25, %v2672_v16  ;;  %v2600_v29 = vpop.f32.mrb[56].mxu1 }
 0x34b   : > { %v3452_v30 = vadd.f32 %v2600_v29, %v1896_v42  ;;  %v2602_v44 = vpop.f32.mrb[57].mxu1 }
 0x34c   : > { %v3453_v34 = vadd.f32 %v2602_v44, %v1896_v42  ;;  %v2604_v35 = vpop.f32.mrb[58].mxu1  ;;  %2933 = vmatprep.subr.bf16.mxu0 %v2710_v21  ;;  %v2765_v44 = vpop.permute.xlu1 %2764 }
 0x34d   : > { %v3454_v36 = vadd.f32 %v2604_v35, %v1901_v32  ;;  %v2606_v38 = vpop.f32.mrb[59].mxu1  ;;  %2934 = vmatpush1.bf16.msra.mxu0 %v2709_v28  ;;  %v2675_v41 = vmax.f32 %v3452_v30, 0.0  ;;  %v2760_v28 = vpop.permute.xlu0 %2759 }
 0x34e   : > { %v3455_v40 = vadd.f32 %v2606_v38, %v1901_v32  ;;  %v2676_v45 = vmax.f32 %v3453_v34, 0.0 }
 0x34f   : > { %v2677_v43 = vmax.f32 %v3454_v36, 0.0 }
 0x350   : > { %v2678_v26 = vmax.f32 %v3455_v40, 0.0 }
 0x351   : > { %v2711_v49 = vpack.c.bf16 %v2677_v43, %v2675_v41 }
 0x352   : > { %v2712_v47 = vpack.c.bf16 %v2678_v26, %v2676_v45  ;;  %v2610_v27 = vpop.f32.mrb[60].mxu1 }
 0x353   : > { %v3456_v48 = vadd.f32 %v2610_v27, %v1906_v46  ;;  %v2612_v50 = vpop.f32.mrb[61].mxu1 }
 0x354   : > { %v3457_v52 = vadd.f32 %v2612_v50, %v1906_v46  ;;  %v2614_v54 = vpop.f32.mrb[62].mxu1  ;;  %2935 = vmatprep.subr.bf16.mxu0 %v2712_v47  ;;  %v2775_v50 = vpop.permute.xlu1 %2774 }
 0x355   : > { %v3458_v55 = vadd.f32 %v2614_v54, %v1911_v51  ;;  %v2616_v56 = vpop.f32.mrb[63].mxu1  ;;  %2936 = vmatpush1.bf16.msra.mxu0 %v2711_v49  ;;  %v2679_v58 = vmax.f32 %v3456_v48, 0.0  ;;  %v2770_v49 = vpop.permute.xlu0 %2769 }
 0x356   : > { %v3459_v57 = vadd.f32 %v2616_v56, %v1911_v51  ;;  %v2680_v60 = vmax.f32 %v3457_v52, 0.0 }
 0x357   : > { %v2681_v59 = vmax.f32 %v3458_v55, 0.0 }
 0x358   : > { %v2682_v61 = vmax.f32 %v3459_v57, 0.0 }
 0x359   : > { %v2713_v31 = vpack.c.bf16 %v2681_v59, %v2679_v58 }
 0x35a   : > { %v2714_v62 = vpack.c.bf16 %v2682_v61, %v2680_v60 }
 0x35c   : > { %2937 = vmatprep.subr.bf16.mxu0 %v2714_v62 }
 0x35d   : > { %2938 = vmatpush1.bf16.msra.mxu0 %v2713_v31  ;;  %v2780_v31 = vpop.permute.xlu0 %2779 }
 0x360   : > { %2940 = vmatmul.mubr.bf16.vlgmr.msra.gmra.mrb[128].mxu0 %v3710_v53 }
 0x361   : > { %2949 = vmatprep.mubr.bf16.mxu0 %v3713_v63 }
 0x368   : > { %2950 = vmatmul.mubr.bf16.gmra.mrb[132].mxu0 %v3715_v33 }
 0x369   : > { %2959 = vmatprep.mubr.bf16.mxu0 %v3716_v1  ;;  %v2785_v1 = vpop.permute.xlu1 %2784 }
 0x370   : > { %2960 = vmatmul.mubr.bf16.gmra.mrb[136].mxu0 %v3718_v2 }
 0x371   : > { %2969 = vmatprep.mubr.bf16.mxu0 %v3719_v3 }
 0x378   : > { %2970 = vmatmul.mubr.bf16.gmra.mrb[140].mxu0 %v3721_v4 }
 0x379   : > { %2979 = vmatprep.mubr.bf16.mxu0 %v3722_v5 }
 0x380   : > { %2980 = vmatmul.mubr.bf16.gmra.mrb[144].mxu0 %v3724_v6 }
 0x381   : > { %2989 = vmatprep.mubr.bf16.mxu0 %v3725_v7 }
 0x388   : > { %2990 = vmatmul.mubr.bf16.gmra.mrb[148].mxu0 %v3727_v8 }
 0x389   : > { %2999 = vmatprep.mubr.bf16.mxu0 %v3728_v9 }
 0x390   : > { %3000 = vmatmul.mubr.bf16.gmra.mrb[152].mxu0 %v3730_v10 }
 0x391   : > { %3009 = vmatprep.mubr.bf16.mxu0 %v3731_v11 }
 0x398   : > { %3010 = vmatmul.mubr.bf16.gmra.mrb[156].mxu0 %v3733_v0  ;;  %v2790_v0 = vpop.permute.xlu0 %2789 }
 0x433   : > { %v2941_v37 = vpop.f32.mrb[128].mxu0 }
 0x434   : > { %v2942_v13 = vadd.f32 %v2941_v37, %v2750_v12  ;;  %v2943_v14 = vpop.f32.mrb[129].mxu0 }
 0x435   : > { %v2944_v17 = vadd.f32 %v2943_v14, %v2750_v12  ;;  %v2945_v39 = vpop.f32.mrb[130].mxu0 }
 0x436   : > { %v2946_v18 = vadd.f32 %v2945_v39, %v2755_v15  ;;  %v2947_v19 = vpop.f32.mrb[131].mxu0  ;;  %v3020_v22 = vmax.f32 %v2942_v13, 0.0 }
 0x437   : > { %v2948_v20 = vadd.f32 %v2947_v19, %v2755_v15  ;;  %v3021_v24 = vmax.f32 %v2944_v17, 0.0  ;;  %v2795_v15 = vpop.permute.xlu1 %2794 }
 0x438   : > { %v3022_v23 = vmax.f32 %v2946_v18, 0.0 }
 0x439   : > { %v3023_v16 = vmax.f32 %v2948_v20, 0.0 }
 0x43a   : > { %v3052_v25 = vpack.c.bf16 %v3022_v23, %v3020_v22 }
 0x43b   : > { %v3053_v42 = vpack.c.bf16 %v3023_v16, %v3021_v24  ;;  %v2951_v21 = vpop.f32.mrb[132].mxu0 }
 0x43c   : > { %v2952_v29 = vadd.f32 %v2951_v21, %v2760_v28  ;;  %v2953_v30 = vpop.f32.mrb[133].mxu0 }
 0x43d   : > { %v2954_v32 = vadd.f32 %v2953_v30, %v2760_v28  ;;  %v2955_v34 = vpop.f32.mrb[134].mxu0  ;;  %3075 = vmatprep.subr.bf16.mxu1 %v3053_v42  ;;  %v2800_v28 = vpop.permute.xlu0 %2799 }
 0x43e   : > { %v2956_v35 = vadd.f32 %v2955_v34, %v2765_v44  ;;  %v2957_v36 = vpop.f32.mrb[135].mxu0  ;;  %3076 = vmatpush1.bf16.msra.mxu1 %v3052_v25  ;;  %v3024_v40 = vmax.f32 %v2952_v29, 0.0 }
 0x43f   : > { %v2958_v38 = vadd.f32 %v2957_v36, %v2765_v44  ;;  %v3025_v43 = vmax.f32 %v2954_v32, 0.0  ;;  %v2805_v44 = vpop.permute.xlu1 %2804 }
 0x440   : > { %v3026_v41 = vmax.f32 %v2956_v35, 0.0 }
 0x441   : > { %v3027_v45 = vmax.f32 %v2958_v38, 0.0 }
 0x442   : > { %v3054_v26 = vpack.c.bf16 %v3026_v41, %v3024_v40 }
 0x443   : > { %v3055_v46 = vpack.c.bf16 %v3027_v45, %v3025_v43  ;;  %v2961_v47 = vpop.f32.mrb[136].mxu0 }
 0x444   : > { %v2962_v27 = vadd.f32 %v2961_v47, %v2770_v49  ;;  %v2963_v48 = vpop.f32.mrb[137].mxu0 }
 0x445   : > { %v2964_v51 = vadd.f32 %v2963_v48, %v2770_v49  ;;  %v2965_v52 = vpop.f32.mrb[138].mxu0  ;;  %3077 = vmatprep.subr.bf16.mxu1 %v3055_v46  ;;  %v2810_v49 = vpop.permute.xlu0 %2809 }
 0x446   : > { %v2966_v54 = vadd.f32 %v2965_v52, %v2775_v50  ;;  %v2967_v55 = vpop.f32.mrb[139].mxu0  ;;  %3078 = vmatpush1.bf16.msra.mxu1 %v3054_v26  ;;  %v3028_v57 = vmax.f32 %v2962_v27, 0.0 }
 0x447   : > { %v2968_v56 = vadd.f32 %v2967_v55, %v2775_v50  ;;  %v3029_v59 = vmax.f32 %v2964_v51, 0.0  ;;  %v2815_v50 = vpop.permute.xlu1 %2814 }
 0x448   : > { %v3030_v58 = vmax.f32 %v2966_v54, 0.0 }
 0x449   : > { %v3031_v60 = vmax.f32 %v2968_v56, 0.0 }
 0x44a   : > { %v3056_v61 = vpack.c.bf16 %v3030_v58, %v3028_v57 }
 0x44b   : > { %v3057_v62 = vpack.c.bf16 %v3031_v60, %v3029_v59  ;;  %v2971_v53 = vpop.f32.mrb[140].mxu0 }
 0x44c   : > { %v2972_v63 = vadd.f32 %v2971_v53, %v2780_v31  ;;  %v2973_v33 = vpop.f32.mrb[141].mxu0 }
 0x44d   : > { %v2974_v2 = vadd.f32 %v2973_v33, %v2780_v31  ;;  %v2975_v3 = vpop.f32.mrb[142].mxu0  ;;  %3079 = vmatprep.subr.bf16.mxu1 %v3057_v62  ;;  %v2820_v31 = vpop.permute.xlu0 %2819 }
 0x44e   : > { %v2976_v4 = vadd.f32 %v2975_v3, %v2785_v1  ;;  %v2977_v5 = vpop.f32.mrb[143].mxu0  ;;  %3080 = vmatpush1.bf16.msra.mxu1 %v3056_v61  ;;  %v3032_v7 = vmax.f32 %v2972_v63, 0.0 }
 0x44f   : > { %v2978_v6 = vadd.f32 %v2977_v5, %v2785_v1  ;;  %v3033_v9 = vmax.f32 %v2974_v2, 0.0  ;;  %v2825_v1 = vpop.permute.xlu1 %2824 }
 0x450   : > { %v3034_v8 = vmax.f32 %v2976_v4, 0.0 }
 0x451   : > { %v3035_v10 = vmax.f32 %v2978_v6, 0.0 }
 0x452   : > { %v3058_v11 = vpack.c.bf16 %v3034_v8, %v3032_v7 }
 0x453   : > { %v3059_v12 = vpack.c.bf16 %v3035_v10, %v3033_v9  ;;  %v2981_v37 = vpop.f32.mrb[144].mxu0 }
 0x454   : > { %v2982_v13 = vadd.f32 %v2981_v37, %v2790_v0  ;;  %v2983_v14 = vpop.f32.mrb[145].mxu0  ;;  %v3073_v37 = vpop.permute.xlu0 %3072 }
 0x455   : > { %v2984_v17 = vadd.f32 %v2983_v14, %v2790_v0  ;;  %v2985_v39 = vpop.f32.mrb[146].mxu0  ;;  %3081 = vmatprep.subr.bf16.mxu1 %v3059_v12  ;;  %v3068_v12 = vld [vmem:[%s4685_s7] sm:$0x1] }
 0x456   : > { %v2986_v18 = vadd.f32 %v2985_v39, %v2795_v15  ;;  %v2987_v19 = vpop.f32.mrb[147].mxu0  ;;  %3082 = vmatpush1.bf16.msra.mxu1 %v3058_v11  ;;  %v3036_v22 = vmax.f32 %v2982_v13, 0.0 }
 0x457   : > { %v2988_v20 = vadd.f32 %v2987_v19, %v2795_v15  ;;  %v3037_v24 = vmax.f32 %v2984_v17, 0.0 }
 0x458   : > { %v3038_v23 = vmax.f32 %v2986_v18, 0.0 }
 0x459   : > { %v3039_v16 = vmax.f32 %v2988_v20, 0.0 }
 0x45a   : > { %v3060_v25 = vpack.c.bf16 %v3038_v23, %v3036_v22 }
 0x45b   : > { %v3061_v42 = vpack.c.bf16 %v3039_v16, %v3037_v24  ;;  %v2991_v21 = vpop.f32.mrb[148].mxu0 }
 0x45c   : > { %v2992_v29 = vadd.f32 %v2991_v21, %v2800_v28  ;;  %v2993_v30 = vpop.f32.mrb[149].mxu0 }
 0x45d   : > { %v2994_v32 = vadd.f32 %v2993_v30, %v2800_v28  ;;  %v2995_v34 = vpop.f32.mrb[150].mxu0  ;;  %3083 = vmatprep.subr.bf16.mxu1 %v3061_v42 }
 0x45e   : > { %v2996_v35 = vadd.f32 %v2995_v34, %v2805_v44  ;;  %v2997_v36 = vpop.f32.mrb[151].mxu0  ;;  %3084 = vmatpush1.bf16.msra.mxu1 %v3060_v25  ;;  %v3040_v40 = vmax.f32 %v2992_v29, 0.0 }
 0x45f   : > { %v2998_v38 = vadd.f32 %v2997_v36, %v2805_v44  ;;  %v3041_v43 = vmax.f32 %v2994_v32, 0.0 }
 0x460   : > { %v3042_v41 = vmax.f32 %v2996_v35, 0.0 }
 0x461   : > { %v3043_v45 = vmax.f32 %v2998_v38, 0.0 }
 0x462   : > { %v3062_v26 = vpack.c.bf16 %v3042_v41, %v3040_v40 }
 0x463   : > { %v3063_v46 = vpack.c.bf16 %v3043_v45, %v3041_v43  ;;  %v3001_v47 = vpop.f32.mrb[152].mxu0 }
 0x464   : > { %v3002_v27 = vadd.f32 %v3001_v47, %v2810_v49  ;;  %v3003_v48 = vpop.f32.mrb[153].mxu0 }
 0x465   : > { %v3004_v51 = vadd.f32 %v3003_v48, %v2810_v49  ;;  %v3005_v52 = vpop.f32.mrb[154].mxu0  ;;  %3085 = vmatprep.subr.bf16.mxu1 %v3063_v46 }
 0x466   : > { %v3006_v54 = vadd.f32 %v3005_v52, %v2815_v50  ;;  %v3007_v55 = vpop.f32.mrb[155].mxu0  ;;  %3086 = vmatpush1.bf16.msra.mxu1 %v3062_v26  ;;  %v3044_v57 = vmax.f32 %v3002_v27, 0.0 }
 0x467   : > { %v3008_v56 = vadd.f32 %v3007_v55, %v2815_v50  ;;  %v3045_v59 = vmax.f32 %v3004_v51, 0.0 }
 0x468   : > { %v3046_v58 = vmax.f32 %v3006_v54, 0.0 }
 0x469   : > { %v3047_v60 = vmax.f32 %v3008_v56, 0.0 }
 0x46a   : > { %v3064_v61 = vpack.c.bf16 %v3046_v58, %v3044_v57 }
 0x46b   : > { %v3065_v62 = vpack.c.bf16 %v3047_v60, %v3045_v59  ;;  %v3011_v53 = vpop.f32.mrb[156].mxu0 }
 0x46c   : > { %v3012_v63 = vadd.f32 %v3011_v53, %v2820_v31  ;;  %v3013_v33 = vpop.f32.mrb[157].mxu0 }
 0x46d   : > { %v3014_v2 = vadd.f32 %v3013_v33, %v2820_v31  ;;  %v3015_v3 = vpop.f32.mrb[158].mxu0  ;;  %3087 = vmatprep.subr.bf16.mxu1 %v3065_v62 }
 0x46e   : > { %v3016_v4 = vadd.f32 %v3015_v3, %v2825_v1  ;;  %v3017_v5 = vpop.f32.mrb[159].mxu0  ;;  %3088 = vmatpush1.bf16.msra.mxu1 %v3064_v61  ;;  %v3048_v7 = vmax.f32 %v3012_v63, 0.0 }
 0x46f   : > { %v3018_v6 = vadd.f32 %v3017_v5, %v2825_v1  ;;  %v3049_v9 = vmax.f32 %v3014_v2, 0.0 }
 0x470   : > { %v3050_v8 = vmax.f32 %v3016_v4, 0.0 }
 0x471   : > { %v3051_v10 = vmax.f32 %v3018_v6, 0.0 }
 0x472   : > { %v3066_v11 = vpack.c.bf16 %v3050_v8, %v3048_v7 }
 0x473   : > { %v3067_v0 = vpack.c.bf16 %v3051_v10, %v3049_v9 }
 0x475   : > { %3089 = vmatprep.subr.bf16.mxu1 %v3067_v0 }
 0x476   : > { %3090 = vmatpush1.bf16.msra.mxu1 %v3066_v11 }
 0x479   : > { %3108 = vmatmul.mubr.bf16.vlgmr.msra.gmra.mrb[64].mxu1 %v3068_v12 }
 0x54c   : > { %v3109_v13 = vpop.f32.mrb[64].mxu1 }
 0x54d   : > { %v3110_v14 = vadd.f32 %v3109_v13, %v3073_v37  ;;  %v3111_v15 = vpop.f32.mrb[65].mxu1 }
 0x54e   : > { %v3112_v17 = vadd.f32 %v3111_v15, %v3073_v37  ;;  %v3113_v39 = vpop.f32.mrb[66].mxu1 }
 0x54f   : > { %v3114_v18 = vpop.f32.mrb[67].mxu1 }
 0x550   : > { %v3118_v19 = vcombine.low %v3110_v14, %v3112_v17 }
 0x552   : > { %3387 = vst.sshfl [vmem:[%s365_s18] sm:$0x33 pattern:$0x76325410] %v3118_v19 }
 0x553   : > { %3747 = shalt.err (!%p3744_p5)
}
 0x554   : > { %s3748_s29 = scalar_lea.hbm %s4631_s28, 64  ;;  %s3752_s23 = scalar_lea.hbm %s4687_s9, 128 }
 0x555   : > { %p3749_p6 = scmp.ne.s32.totalorder %s4631_s28, %s3748_s29  ;;  %p3753_p10 = scmp.lt.u32.totalorder %s4631_s28, %s4687_s9 }
 0x556   : > { %p3754_p11 = scmp.lt.u32.totalorder %s3752_s23, %s3748_s29  ;;  %p3756_p13 = scmp.lt.u32.totalorder %s3748_s29, %s4631_s28 }
 0x557   : > { %p3750_p7 = pnand %p3749_p6, %p3906_p4 }
 0x558   : > { %p3755_p12 = por %p3754_p11, %p3753_p10 }
 0x559   : > { %p3751_p9 = pneg %p3750_p7 }
 0x55a   : > { %p3757_p0 = por %p3756_p13, %p3755_p12 }
 0x55c   : > { %p3758_p1 = pnand %p3757_p0, %p3751_p9 }
 0x55e   : > { %3761 = shalt.err (!%p3758_p1)
}
 0x55f   : > { %3524 = dma.vmem_to_hbm [thread:$0]  (%p3906_p4), %s4633_s20, 64, %s4631_s28, %s3129_s25  }
 0x560 PF: > { %p3530_p2 = scmp.ge.s32.totalorder %s3812_s14, 2  ;;  %s3157_s26 = sand.u32 1, %s3792_s30  }
 0x561   : > { %s3158_s27 = scalar_lea.sflag [#allocation3], %s3157_s26 }
 0x562   : > { %p3527_p3 = pnand %p3530_p2, %p3913_p8 }
 0x564   : > { %3787 = dma.done.wait (!%p3527_p3), %s3158_s27, 64  }
 0x565   : > { %3789 = vsyncadd (!%p3527_p3), %s3158_s27, 4294967232  ;;  %s22_s14 = sadd.s32 1, %s3812_s14   ;;  %s4690_s30 = smov %s3796_s10 }
 0x566   : > { %p19_p5 = scmp.ge.s32.totalorder %s22_s14, 4   ;;  %s4691_s10 = smov %s3800_s11 }
 0x567   : > { %s4692_s11 = smov %s3919_s22  ;;  %s4693_s12 = smov %s3808_s13 }
 0x568   : > { %s4694_s13 = smov %s4696_s17  ;;  %21 = sbr.rel (!%p19_p5) target bundleno = 4 (0x4), region = 94 }
 0x56f   :  { %3163 = vsyncpa [#allocation3], 1 }
 0x570   :  { %3165 = vsyncpa [#allocation3 + $0x1], 1 }

</bundles_post_ra>
